<compile_context>
chip_gen: v6e
topology: v6e:2x2x1
jax: 0.10.0
libtpu: 0.0.40
codegen_flags: <defaults>
</compile_context>

<pallas_src>
import functools
import math

import jax
import jax.numpy as jnp
from jax.experimental import pallas as pl
from jax.experimental.pallas import tpu as pltpu

RELU_CAP = 20.0  # nn.Hardtanh(0, 20)


# ---------------------------------------------------------------------------
# small helpers
# ---------------------------------------------------------------------------
def _round_up(x, m):
    return (x + m - 1) // m * m


def _row_spec(tm, c):
    # [M_pad, C] tensor tiled along rows; channel (lane) dim kept whole so the
    # BlockSpec last dim always equals the full array dim.
    return pl.BlockSpec((tm, c), lambda i: (i, 0))


def _const_spec(shape):
    # Weights / folded-BN vectors: same block every grid step -> stays resident.
    return pl.BlockSpec(shape, lambda i: (0, 0))


def _cparams():
    return pltpu.CompilerParams(
        dimension_semantics=("parallel",),
        vmem_limit_bytes=32 * 1024 * 1024,
    )


def _pad_rows(a, m_pad):
    m = a.shape[0]
    if m == m_pad:
        return a
    return jnp.pad(a, ((0, m_pad - m), (0, 0)))


def _im2col3x3(x_flat_c, n, h, w):
    # [M, C] (M = n*h*w) -> [M, 9*C], taps ordered (kh, kw, cin).
    c = x_flat_c.shape[-1]
    xs = x_flat_c.reshape(n, h, w, c)
    xp = jnp.pad(xs, ((0, 0), (1, 1), (1, 1), (0, 0)))
    taps = [xp[:, kh:kh + h, kw:kw + w, :] for kh in range(3) for kw in range(3)]
    return jnp.concatenate(taps, axis=-1).reshape(n * h * w, 9 * c)


# ---------------------------------------------------------------------------
# Pallas kernels
# ---------------------------------------------------------------------------
def _matmul_bn_relu_kernel(x_ref, w_ref, s_ref, b_ref, o_ref):
    # [TM, K] @ [K, C] -> folded-BN scale/bias -> clamp(0, 20)
    y = jnp.dot(x_ref[...], w_ref[...], preferred_element_type=jnp.float32)
    y = jnp.clip(y * s_ref[...] + b_ref[...], 0.0, RELU_CAP)
    o_ref[...] = y.astype(o_ref.dtype)


def _branch_aff_kernel(patch_ref, cw_ref, s_ref, b_ref,
                       out1_ref, w1x_ref, w1y_ref, s1_ref, b1_ref,
                       w2_ref, s2_ref, b2_ref, o_ref, *, width, next_chunk):
    # branch i: 3x3 conv (im2col matmul) + BN + clamp, then fused
    # AFF(sp_i, spx[i+1]) epilogue.  Output slab: [sp_i | AFF(sp_i, spx_next)].
    y = jnp.dot(patch_ref[...], cw_ref[...], preferred_element_type=jnp.float32)
    sp = jnp.clip(y * s_ref[...] + b_ref[...], 0.0, RELU_CAP)            # [TM, w] f32

    xn = out1_ref[...][:, next_chunk * width:(next_chunk + 1) * width]
    xn = xn.astype(jnp.float32)                                          # spx[i+1]

    # cat((sp, xn), channel) @ W1 == sp @ W1[:w] + xn @ W1[w:]
    h = (jnp.dot(sp.astype(jnp.bfloat16), w1x_ref[...],
                 preferred_element_type=jnp.float32)
         + jnp.dot(xn.astype(jnp.bfloat16), w1y_ref[...],
                   preferred_element_type=jnp.float32))
    h = h * s1_ref[...] + b1_ref[...]            # conv bias + BN folded
    h = h * jax.nn.sigmoid(h)                    # SiLU
    a = jnp.dot(h.astype(jnp.bfloat16), w2_ref[...],
                preferred_element_type=jnp.float32)
    a = a * s2_ref[...] + b2_ref[...]
    att = 1.0 + jnp.tanh(a)
    fused = sp * att + xn * (2.0 - att)

    o_ref[...] = jnp.concatenate([sp, fused], axis=-1).astype(o_ref.dtype)


def _final_kernel(*refs, nscale, width, has_shortcut):
    # conv3 (row-split per branch) + bn3 + shortcut(+bn) + add + clamp
    sp_refs = refs[:nscale]
    w3_refs = refs[nscale:2 * nscale]
    s3_ref, b3_ref, x_ref = refs[2 * nscale:2 * nscale + 3]
    idx = 2 * nscale + 3
    if has_shortcut:
        scw_ref, scs_ref, scb_ref = refs[idx:idx + 3]
        idx += 3
    o_ref = refs[idx]

    acc = None
    for i in range(nscale):
        sp = sp_refs[i][...][:, :width]
        d = jnp.dot(sp, w3_refs[i][...], preferred_element_type=jnp.float32)
        acc = d if acc is None else acc + d
    y = acc * s3_ref[...] + b3_ref[...]

    if has_shortcut:
        r = jnp.dot(x_ref[...], scw_ref[...], preferred_element_type=jnp.float32)
        r = r * scs_ref[...] + scb_ref[...]
    else:
        r = x_ref[...].astype(jnp.float32)

    o_ref[...] = jnp.clip(y + r, 0.0, RELU_CAP).astype(o_ref.dtype)


# ---------------------------------------------------------------------------
# pallas_call wrappers (gridded over rows)
# ---------------------------------------------------------------------------
def conv1_bn_relu(x_bf, w, scale_v, bias_v, *, tm):
    m_pad, cin = x_bf.shape
    cs = w.shape[1]
    return pl.pallas_call(
        _matmul_bn_relu_kernel,
        grid=(m_pad // tm,),
        in_specs=[_row_spec(tm, cin), _const_spec((cin, cs)),
                  _const_spec((1, cs)), _const_spec((1, cs))],
        out_specs=_row_spec(tm, cs),
        out_shape=jax.ShapeDtypeStruct((m_pad, cs), jnp.bfloat16),
        compiler_params=_cparams(),
    )(x_bf, w, scale_v.reshape(1, -1), bias_v.reshape(1, -1))


def branch_conv(patches, cw, scale_v, bias_v, *, width, tm):
    m_pad, k = patches.shape
    return pl.pallas_call(
        _matmul_bn_relu_kernel,
        grid=(m_pad // tm,),
        in_specs=[_row_spec(tm, k), _const_spec((k, width)),
                  _const_spec((1, width)), _const_spec((1, width))],
        out_specs=_row_spec(tm, width),
        out_shape=jax.ShapeDtypeStruct((m_pad, width), jnp.bfloat16),
        compiler_params=_cparams(),
    )(patches, cw, scale_v.reshape(1, -1), bias_v.reshape(1, -1))


def branch_conv_aff(patches, out1, cw, scale_v, bias_v, *, aff, width,
                    next_chunk, tm):
    m_pad, k = patches.shape
    cs = out1.shape[1]
    inter = aff["w1x"].shape[1]
    kern = functools.partial(_branch_aff_kernel, width=width,
                             next_chunk=next_chunk)
    return pl.pallas_call(
        kern,
        grid=(m_pad // tm,),
        in_specs=[_row_spec(tm, k), _const_spec((k, width)),
                  _const_spec((1, width)), _const_spec((1, width)),
                  _row_spec(tm, cs),
                  _const_spec((width, inter)), _const_spec((width, inter)),
                  _const_spec((1, inter)), _const_spec((1, inter)),
                  _const_spec((inter, width)),
                  _const_spec((1, width)), _const_spec((1, width))],
        out_specs=_row_spec(tm, 2 * width),
        out_shape=jax.ShapeDtypeStruct((m_pad, 2 * width), jnp.bfloat16),
        compiler_params=_cparams(),
    )(patches, cw, scale_v.reshape(1, -1), bias_v.reshape(1, -1),
      out1, aff["w1x"], aff["w1y"],
      aff["s1"].reshape(1, -1), aff["b1"].reshape(1, -1),
      aff["w2"], aff["s2"].reshape(1, -1), aff["b2"].reshape(1, -1))


def final_fused(sp_slabs, w3_chunks, scale3, bias3, x_in, sc, *, width, cout, tm):
    m_pad = x_in.shape[0]
    nscale = len(sp_slabs)
    has_sc = sc is not None
    kern = functools.partial(_final_kernel, nscale=nscale, width=width,
                             has_shortcut=has_sc)
    in_specs = [_row_spec(tm, s.shape[1]) for s in sp_slabs]
    args = list(sp_slabs)
    in_specs += [_const_spec(wc.shape) for wc in w3_chunks]
    args += list(w3_chunks)
    in_specs += [_const_spec((1, cout)), _const_spec((1, cout)),
                 _row_spec(tm, x_in.shape[1])]
    args += [scale3.reshape(1, -1), bias3.reshape(1, -1), x_in]
    if has_sc:
        scw, scs, scb = sc
        in_specs += [_const_spec(scw.shape), _const_spec((1, cout)),
                     _const_spec((1, cout))]
        args += [scw, scs.reshape(1, -1), scb.reshape(1, -1)]
    return pl.pallas_call(
        kern,
        grid=(m_pad // tm,),
        in_specs=in_specs,
        out_specs=_row_spec(tm, cout),
        out_shape=jax.ShapeDtypeStruct((m_pad, cout), jnp.float32),
        compiler_params=_cparams(),
    )(*args)


# ---------------------------------------------------------------------------
# Deterministic parameter construction (synthetic, not a checkpoint load)
# ---------------------------------------------------------------------------
def _fold_bn(gamma, beta, mean, var, conv_bias=None, eps=1e-5):
    scale = gamma / jnp.sqrt(var + eps)
    cb = conv_bias if conv_bias is not None else jnp.zeros_like(mean)
    bias = beta + scale * (cb - mean)
    return scale, bias


def _bn_raw(key, c):
    k1, k2, k3, k4 = jax.random.split(key, 4)
    gamma = 1.0 + 0.1 * jax.random.normal(k1, (c,), jnp.float32)
    beta = 0.1 * jax.random.normal(k2, (c,), jnp.float32)
    mean = 0.1 * jax.random.normal(k3, (c,), jnp.float32)
    var = jax.random.uniform(k4, (c,), jnp.float32, 0.5, 1.5)
    return gamma, beta, mean, var


def init_params(key, in_planes, planes, stride=1, base_width=26, scale=2,
                expansion=2):
    width = int(math.floor(planes * (base_width / 64.0)))
    inter = max(1, int(width // 4))  # AFF(channels=width, r=4)
    keys = iter(jax.random.split(key, 64))

    def w(cin, cout):
        # Matmul weights feed the MXU in bf16.  3x3 weights are stored in
        # im2col layout [9*Cin, Cout] with rows ordered (kh, kw, cin), matching
        # the tap order produced by _im2col3x3.
        return (0.1 * jax.random.normal(next(keys), (cin, cout),
                                        jnp.float32)).astype(jnp.bfloat16)

    p = {"width": width, "scale": scale, "expansion": expansion,
         "stride": stride, "in_planes": in_planes, "planes": planes}

    p["conv1_w"] = w(in_planes, width * scale)
    p["bn1"] = _fold_bn(*_bn_raw(next(keys), width * scale))

    p["convs_w"] = [w(9 * width, width) for _ in range(scale)]
    p["bns"] = [_fold_bn(*_bn_raw(next(keys), width)) for _ in range(scale)]

    p["aff"] = []
    for _ in range(scale - 1):
        w1 = w(2 * width, inter)
        b1c = 0.1 * jax.random.normal(next(keys), (inter,), jnp.float32)
        s1, b1 = _fold_bn(*_bn_raw(next(keys), inter), conv_bias=b1c)
        w2 = w(inter, width)
        b2c = 0.1 * jax.random.normal(next(keys), (width,), jnp.float32)
        s2, b2 = _fold_bn(*_bn_raw(next(keys), width), conv_bias=b2c)
        p["aff"].append({"w1x": w1[:width], "w1y": w1[width:],
                         "s1": s1, "b1": b1, "w2": w2, "s2": s2, "b2": b2})

    p["conv3_w"] = w(width * scale, planes * expansion)
    p["bn3"] = _fold_bn(*_bn_raw(next(keys), planes * expansion))

    p["has_shortcut"] = (stride != 1) or (in_planes != expansion * planes)
    if p["has_shortcut"]:
        p["sc_w"] = w(in_planes, expansion * planes)
        p["sc_bn"] = _fold_bn(*_bn_raw(next(keys), expansion * planes))
    return p


# ---------------------------------------------------------------------------
# Forward pass (glue in plain JAX, hot paths in fused/gridded Pallas kernels)
# ---------------------------------------------------------------------------
def eres2netv2_aff_block(x_nchw, p, tm=1024):
    n, cin, _, _ = x_nchw.shape
    stride, width, nscale = p["stride"], p["width"], p["scale"]
    cout = p["planes"] * p["expansion"]

    x_nhwc = jnp.transpose(x_nchw, (0, 2, 3, 1)).astype(jnp.float32)
    # 1x1 conv with stride == spatial subsampling before the matmul.
    # TODO(synk): fold the stride into a BlockSpec index_map over (H, W)
    # instead of this XLA strided slice (only matters when stride != 1).
    x_s = x_nhwc[:, ::stride, ::stride, :] if stride != 1 else x_nhwc
    hs, ws = x_s.shape[1], x_s.shape[2]
    m = n * hs * ws
    tile = max(8, min(tm, _round_up(m, 8)))
    m_pad = _round_up(m, tile)

    x_flat = x_s.reshape(m, cin)
    x_bf = _pad_rows(x_flat.astype(jnp.bfloat16), m_pad)

    # conv1 -> bn1 -> clamp(0, 20)
    out1 = conv1_bn_relu(x_bf, p["conv1_w"], *p["bn1"], tm=tile)  # [m_pad, w*s]

    # branch loop: 3x3 conv (im2col matmul) + BN + clamp, with the AFF that
    # feeds the next branch fused into the same kernel.
    cur = out1[:m, :width]                       # spx[0]
    sp_slabs = []
    for i in range(nscale):
        patches = _pad_rows(_im2col3x3(cur, n, hs, ws), m_pad)  # [m_pad, 9w] bf16
        if i < nscale - 1:
            slab = branch_conv_aff(patches, out1, p["convs_w"][i], *p["bns"][i],
                                   aff=p["aff"][i], width=width,
                                   next_chunk=i + 1, tm=tile)   # [m_pad, 2w]
            cur = slab[:m, width:]               # AFF(sp_i, spx[i+1]) -> next branch
        else:
            slab = branch_conv(patches, p["convs_w"][i], *p["bns"][i],
                               width=width, tm=tile)            # [m_pad, w]
        sp_slabs.append(slab)

    # conv3 + bn3 + shortcut(+bn) + residual add + clamp, single fused kernel.
    w3_chunks = [p["conv3_w"][i * width:(i + 1) * width, :] for i in range(nscale)]
    if p["has_shortcut"]:
        x_in = x_bf
        sc = (p["sc_w"], *p["sc_bn"])
    else:
        x_in = _pad_rows(x_flat, m_pad)          # identity residual stays f32
        sc = None
    out = final_fused(sp_slabs, w3_chunks, *p["bn3"], x_in, sc,
                      width=width, cout=cout, tm=tile)          # [m_pad, cout] f32

    out = out[:m].reshape(n, hs, ws, cout)
    return jnp.transpose(out, (0, 3, 1, 2))      # back to NCHW


if __name__ == "__main__":
    key = jax.random.PRNGKey(0)
    kx, kp = jax.random.split(key)

    # Small shapes: batch=2, in_planes=32, planes=32, 8x8 spatial, stride=1.
    # width = floor(32 * 26/64) = 13, scale = 2, expansion = 2 -> out channels 64.
    N, IN_PLANES, PLANES, H, W = 2, 32, 32, 8, 8
    x = jax.random.normal(kx, (N, IN_PLANES, H, W), jnp.float32)
    params = init_params(kp, IN_PLANES, PLANES, stride=1)

    fwd = jax.jit(lambda inp: eres2netv2_aff_block(inp, params))
    out = fwd(x)
    jax.block_until_ready(out)
    assert out.shape == (N, PLANES * 2, H, W), out.shape
    print("KERNEL_OK")
</pallas_src>

<mosaic_0001>
module attributes {stable_mosaic.version = 11 : i64} {
  func.func @_matmul_bn_relu_kernel(%arg0: i32, %arg1: memref<128x32xbf16, #tpu.memory_space<vmem>>, %arg2: memref<32x26xbf16, #tpu.memory_space<vmem>>, %arg3: memref<1x26xf32, #tpu.memory_space<vmem>>, %arg4: memref<1x26xf32, #tpu.memory_space<vmem>>, %arg5: memref<128x26xbf16, #tpu.memory_space<vmem>>) attributes {dimension_semantics = [#tpu.dimension_semantics<parallel>], iteration_bounds = array<i64: 1>, scalar_prefetch = 0 : i64, scratch_operands = 0 : i64, tpu.core_type = #tpu.core_type<tc>, window_params = [{transform_indices = @transform_0, window_bounds = array<i64: 128, 32>}, {pipeline_mode = #tpu.pipeline_mode<synchronous>, transform_indices = @transform_1, window_bounds = array<i64: 32, 26>}, {pipeline_mode = #tpu.pipeline_mode<synchronous>, transform_indices = @transform_2, window_bounds = array<i64: 1, 26>}, {pipeline_mode = #tpu.pipeline_mode<synchronous>, transform_indices = @transform_3, window_bounds = array<i64: 1, 26>}, {transform_indices = @transform_4, window_bounds = array<i64: 128, 26>}]} {
    %c0 = arith.constant 0 : index
    %c0_0 = arith.constant 0 : index
    %0 = vector.load %arg1[%c0, %c0_0] : memref<128x32xbf16, #tpu.memory_space<vmem>>, vector<128x32xbf16>
    %c0_1 = arith.constant 0 : index
    %c0_2 = arith.constant 0 : index
    %1 = vector.load %arg2[%c0_1, %c0_2] : memref<32x26xbf16, #tpu.memory_space<vmem>>, vector<32x26xbf16>
    %cst = arith.constant dense<0.000000e+00> : vector<128x26xf32>
    %2 = tpu.matmul %0, %1, %cst {dimension_numbers = #tpu.dot_dimension_numbers<[1], [0], [0], [1], [0, 0, 1, 1], [], []>} : vector<128x32xbf16>, vector<32x26xbf16>, vector<128x26xf32> -> vector<128x26xf32>
    %c0_3 = arith.constant 0 : index
    %c0_4 = arith.constant 0 : index
    %3 = vector.load %arg3[%c0_3, %c0_4] : memref<1x26xf32, #tpu.memory_space<vmem>>, vector<1x26xf32>
    %4 = vector.broadcast %3 : vector<1x26xf32> to vector<128x26xf32>
    %5 = arith.mulf %2, %4 : vector<128x26xf32>
    %c0_5 = arith.constant 0 : index
    %c0_6 = arith.constant 0 : index
    %6 = vector.load %arg4[%c0_5, %c0_6] : memref<1x26xf32, #tpu.memory_space<vmem>>, vector<1x26xf32>
    %7 = vector.broadcast %6 : vector<1x26xf32> to vector<128x26xf32>
    %8 = arith.addf %5, %7 : vector<128x26xf32>
    %cst_7 = arith.constant 0.000000e+00 : f32
    %cst_8 = arith.constant 2.000000e+01 : f32
    %9 = vector.broadcast %cst_7 : f32 to vector<128x26xf32>
    %10 = arith.maximumf %9, %8 : vector<128x26xf32>
    %11 = vector.broadcast %cst_8 : f32 to vector<128x26xf32>
    %12 = arith.minimumf %11, %10 : vector<128x26xf32>
    %13 = arith.truncf %12 : vector<128x26xf32> to vector<128x26xbf16>
    %c0_9 = arith.constant 0 : index
    %c0_10 = arith.constant 0 : index
    %14 = vector.load %arg5[%c0_9, %c0_10] : memref<128x26xbf16, #tpu.memory_space<vmem>>, vector<128x26xbf16>
    tpu.vector_store %arg5[%c0_9, %c0_10], %13 {strides = array<i32>} : memref<128x26xbf16, #tpu.memory_space<vmem>>, vector<128x26xbf16>,
    return
  }
  func.func @transform_0(%arg0: i32) -> (i32, i32) {
    %c0_i32 = arith.constant 0 : i32
    %c0_i32_0 = arith.constant 0 : i32
    return %arg0, %c0_i32 : i32, i32
  }
  func.func @transform_1(%arg0: i32) -> (i32, i32) {
    %c0_i32 = arith.constant 0 : i32
    %c0_i32_0 = arith.constant 0 : i32
    %c0_i32_1 = arith.constant 0 : i32
    return %c0_i32, %c0_i32_0 : i32, i32
  }
  func.func @transform_2(%arg0: i32) -> (i32, i32) {
    %c0_i32 = arith.constant 0 : i32
    %c0_i32_0 = arith.constant 0 : i32
    %c0_i32_1 = arith.constant 0 : i32
    return %c0_i32, %c0_i32_0 : i32, i32
  }
  func.func @transform_3(%arg0: i32) -> (i32, i32) {
    %c0_i32 = arith.constant 0 : i32
    %c0_i32_0 = arith.constant 0 : i32
    %c0_i32_1 = arith.constant 0 : i32
    return %c0_i32, %c0_i32_0 : i32, i32
  }
  func.func @transform_4(%arg0: i32) -> (i32, i32) {
    %c0_i32 = arith.constant 0 : i32
    %c0_i32_0 = arith.constant 0 : i32
    return %arg0, %c0_i32 : i32, i32
  }
}

module attributes {stable_mosaic.version = 11 : i64} {
  func.func @_branch_aff_kernel(%arg0: i32, %arg1: memref<128x117xbf16, #tpu.memory_space<vmem>>, %arg2: memref<117x13xbf16, #tpu.memory_space<vmem>>, %arg3: memref<1x13xf32, #tpu.memory_space<vmem>>, %arg4: memref<1x13xf32, #tpu.memory_space<vmem>>, %arg5: memref<128x26xbf16, #tpu.memory_space<vmem>>, %arg6: memref<13x3xbf16, #tpu.memory_space<vmem>>, %arg7: memref<13x3xbf16, #tpu.memory_space<vmem>>, %arg8: memref<1x3xf32, #tpu.memory_space<vmem>>, %arg9: memref<1x3xf32, #tpu.memory_space<vmem>>, %arg10: memref<3x13xbf16, #tpu.memory_space<vmem>>, %arg11: memref<1x13xf32, #tpu.memory_space<vmem>>, %arg12: memref<1x13xf32, #tpu.memory_space<vmem>>, %arg13: memref<128x26xbf16, #tpu.memory_space<vmem>>) attributes {dimension_semantics = [#tpu.dimension_semantics<parallel>], iteration_bounds = array<i64: 1>, scalar_prefetch = 0 : i64, scratch_operands = 0 : i64, tpu.core_type = #tpu.core_type<tc>, window_params = [{transform_indices = @transform_0, window_bounds = array<i64: 128, 117>}, {pipeline_mode = #tpu.pipeline_mode<synchronous>, transform_indices = @transform_1, window_bounds = array<i64: 117, 13>}, {pipeline_mode = #tpu.pipeline_mode<synchronous>, transform_indices = @transform_2, window_bounds = array<i64: 1, 13>}, {pipeline_mode = #tpu.pipeline_mode<synchronous>, transform_indices = @transform_3, window_bounds = array<i64: 1, 13>}, {transform_indices = @transform_4, window_bounds = array<i64: 128, 26>}, {pipeline_mode = #tpu.pipeline_mode<synchronous>, transform_indices = @transform_5, window_bounds = array<i64: 13, 3>}, {pipeline_mode = #tpu.pipeline_mode<synchronous>, transform_indices = @transform_6, window_bounds = array<i64: 13, 3>}, {pipeline_mode = #tpu.pipeline_mode<synchronous>, transform_indices = @transform_7, window_bounds = array<i64: 1, 3>}, {pipeline_mode = #tpu.pipeline_mode<synchronous>, transform_indices = @transform_8, window_bounds = array<i64: 1, 3>}, {pipeline_mode = #tpu.pipeline_mode<synchronous>, transform_indices = @transform_9, window_bounds = array<i64: 3, 13>}, {pipeline_mode = #tpu.pipeline_mode<synchronous>, transform_indices = @transform_10, window_bounds = array<i64: 1, 13>}, {pipeline_mode = #tpu.pipeline_mode<synchronous>, transform_indices = @transform_11, window_bounds = array<i64: 1, 13>}, {transform_indices = @transform_12, window_bounds = array<i64: 128, 26>}]} {
    %c0 = arith.constant 0 : index
    %c0_0 = arith.constant 0 : index
    %0 = vector.load %arg1[%c0, %c0_0] : memref<128x117xbf16, #tpu.memory_space<vmem>>, vector<128x117xbf16>
    %c0_1 = arith.constant 0 : index
    %c0_2 = arith.constant 0 : index
    %1 = vector.load %arg2[%c0_1, %c0_2] : memref<117x13xbf16, #tpu.memory_space<vmem>>, vector<117x13xbf16>
    %cst = arith.constant dense<0.000000e+00> : vector<128x13xf32>
    %2 = tpu.matmul %0, %1, %cst {dimension_numbers = #tpu.dot_dimension_numbers<[1], [0], [0], [1], [0, 0, 1, 1], [], []>} : vector<128x117xbf16>, vector<117x13xbf16>, vector<128x13xf32> -> vector<128x13xf32>
    %c0_3 = arith.constant 0 : index
    %c0_4 = arith.constant 0 : index
    %3 = vector.load %arg3[%c0_3, %c0_4] : memref<1x13xf32, #tpu.memory_space<vmem>>, vector<1x13xf32>
    %4 = vector.broadcast %3 : vector<1x13xf32> to vector<128x13xf32>
    %5 = arith.mulf %2, %4 : vector<128x13xf32>
    %c0_5 = arith.constant 0 : index
    %c0_6 = arith.constant 0 : index
    %6 = vector.load %arg4[%c0_5, %c0_6] : memref<1x13xf32, #tpu.memory_space<vmem>>, vector<1x13xf32>
    %7 = vector.broadcast %6 : vector<1x13xf32> to vector<128x13xf32>
    %8 = arith.addf %5, %7 : vector<128x13xf32>
    %cst_7 = arith.constant 0.000000e+00 : f32
    %cst_8 = arith.constant 2.000000e+01 : f32
    %9 = vector.broadcast %cst_7 : f32 to vector<128x13xf32>
    %10 = arith.maximumf %9, %8 : vector<128x13xf32>
    %11 = vector.broadcast %cst_8 : f32 to vector<128x13xf32>
    %12 = arith.minimumf %11, %10 : vector<128x13xf32>
    %c0_9 = arith.constant 0 : index
    %c0_10 = arith.constant 0 : index
    %13 = vector.load %arg5[%c0_9, %c0_10] : memref<128x26xbf16, #tpu.memory_space<vmem>>, vector<128x26xbf16>
    %14 = vector.extract_strided_slice %13 {offsets = [0, 13], sizes = [128, 13], strides = [1, 1]} : vector<128x26xbf16> to vector<128x13xbf16>
    %15 = arith.extf %14 : vector<128x13xbf16> to vector<128x13xf32>
    %16 = arith.truncf %12 : vector<128x13xf32> to vector<128x13xbf16>
    %c0_11 = arith.constant 0 : index
    %c0_12 = arith.constant 0 : index
    %17 = vector.load %arg6[%c0_11, %c0_12] : memref<13x3xbf16, #tpu.memory_space<vmem>>, vector<13x3xbf16>
    %cst_13 = arith.constant dense<0.000000e+00> : vector<128x3xf32>
    %18 = tpu.matmul %16, %17, %cst_13 {dimension_numbers = #tpu.dot_dimension_numbers<[1], [0], [0], [1], [0, 0, 1, 1], [], []>} : vector<128x13xbf16>, vector<13x3xbf16>, vector<128x3xf32> -> vector<128x3xf32>
    %19 = arith.truncf %15 : vector<128x13xf32> to vector<128x13xbf16>
    %c0_14 = arith.constant 0 : index
    %c0_15 = arith.constant 0 : index
    %20 = vector.load %arg7[%c0_14, %c0_15] : memref<13x3xbf16, #tpu.memory_space<vmem>>, vector<13x3xbf16>
    %cst_16 = arith.constant dense<0.000000e+00> : vector<128x3xf32>
    %21 = tpu.matmul %19, %20, %cst_16 {dimension_numbers = #tpu.dot_dimension_numbers<[1], [0], [0], [1], [0, 0, 1, 1], [], []>} : vector<128x13xbf16>, vector<13x3xbf16>, vector<128x3xf32> -> vector<128x3xf32>
    %22 = arith.addf %18, %21 : vector<128x3xf32>
    %c0_17 = arith.constant 0 : index
    %c0_18 = arith.constant 0 : index
    %23 = vector.load %arg8[%c0_17, %c0_18] : memref<1x3xf32, #tpu.memory_space<vmem>>, vector<1x3xf32>
    %24 = vector.broadcast %23 : vector<1x3xf32> to vector<128x3xf32>
    %25 = arith.mulf %22, %24 : vector<128x3xf32>
    %c0_19 = arith.constant 0 : index
    %c0_20 = arith.constant 0 : index
    %26 = vector.load %arg9[%c0_19, %c0_20] : memref<1x3xf32, #tpu.memory_space<vmem>>, vector<1x3xf32>
    %27 = vector.broadcast %26 : vector<1x3xf32> to vector<128x3xf32>
    %28 = arith.addf %25, %27 : vector<128x3xf32>
    %29 = arith.negf %28 : vector<128x3xf32>
    %30 = math.exp %29 : vector<128x3xf32>
    %cst_21 = arith.constant 1.000000e+00 : f32
    %31 = vector.broadcast %cst_21 : f32 to vector<128x3xf32>
    %32 = arith.addf %31, %30 : vector<128x3xf32>
    %33 = arith.divf %31, %32 : vector<128x3xf32>
    %34 = arith.mulf %28, %33 : vector<128x3xf32>
    %35 = arith.truncf %34 : vector<128x3xf32> to vector<128x3xbf16>
    %c0_22 = arith.constant 0 : index
    %c0_23 = arith.constant 0 : index
    %36 = vector.load %arg10[%c0_22, %c0_23] : memref<3x13xbf16, #tpu.memory_space<vmem>>, vector<3x13xbf16>
    %cst_24 = arith.constant dense<0.000000e+00> : vector<128x13xf32>
    %37 = tpu.matmul %35, %36, %cst_24 {dimension_numbers = #tpu.dot_dimension_numbers<[1], [0], [0], [1], [0, 0, 1, 1], [], []>} : vector<128x3xbf16>, vector<3x13xbf16>, vector<128x13xf32> -> vector<128x13xf32>
    %c0_25 = arith.constant 0 : index
    %c0_26 = arith.constant 0 : index
    %38 = vector.load %arg11[%c0_25, %c0_26] : memref<1x13xf32, #tpu.memory_space<vmem>>, vector<1x13xf32>
    %39 = vector.broadcast %38 : vector<1x13xf32> to vector<128x13xf32>
    %40 = arith.mulf %37, %39 : vector<128x13xf32>
    %c0_27 = arith.constant 0 : index
    %c0_28 = arith.constant 0 : index
    %41 = vector.load %arg12[%c0_27, %c0_28] : memref<1x13xf32, #tpu.memory_space<vmem>>, vector<1x13xf32>
    %42 = vector.broadcast %41 : vector<1x13xf32> to vector<128x13xf32>
    %43 = arith.addf %40, %42 : vector<128x13xf32>
    %44 = math.tanh %43 : vector<128x13xf32>
    %cst_29 = arith.constant 1.000000e+00 : f32
    %45 = vector.broadcast %cst_29 : f32 to vector<128x13xf32>
    %46 = arith.addf %45, %44 : vector<128x13xf32>
    %47 = arith.mulf %12, %46 : vector<128x13xf32>
    %cst_30 = arith.constant 2.000000e+00 : f32
    %48 = vector.broadcast %cst_30 : f32 to vector<128x13xf32>
    %49 = arith.subf %48, %46 : vector<128x13xf32>
    %50 = arith.mulf %15, %49 : vector<128x13xf32>
    %51 = arith.addf %47, %50 : vector<128x13xf32>
    %52 = tpu.concatenate %12, %51 in 1 : vector<128x13xf32>, vector<128x13xf32> -> vector<128x26xf32>
    %53 = arith.truncf %52 : vector<128x26xf32> to vector<128x26xbf16>
    %c0_31 = arith.constant 0 : index
    %c0_32 = arith.constant 0 : index
    %54 = vector.load %arg13[%c0_31, %c0_32] : memref<128x26xbf16, #tpu.memory_space<vmem>>, vector<128x26xbf16>
    tpu.vector_store %arg13[%c0_31, %c0_32], %53 {strides = array<i32>} : memref<128x26xbf16, #tpu.memory_space<vmem>>, vector<128x26xbf16>,
    return
  }
  func.func @transform_0(%arg0: i32) -> (i32, i32) {
    %c0_i32 = arith.constant 0 : i32
    %c0_i32_0 = arith.constant 0 : i32
    return %arg0, %c0_i32 : i32, i32
  }
  func.func @transform_1(%arg0: i32) -> (i32, i32) {
    %c0_i32 = arith.constant 0 : i32
    %c0_i32_0 = arith.constant 0 : i32
    %c0_i32_1 = arith.constant 0 : i32
    return %c0_i32, %c0_i32_0 : i32, i32
  }
  func.func @transform_2(%arg0: i32) -> (i32, i32) {
    %c0_i32 = arith.constant 0 : i32
    %c0_i32_0 = arith.constant 0 : i32
    %c0_i32_1 = arith.constant 0 : i32
    return %c0_i32, %c0_i32_0 : i32, i32
  }
  func.func @transform_3(%arg0: i32) -> (i32, i32) {
    %c0_i32 = arith.constant 0 : i32
    %c0_i32_0 = arith.constant 0 : i32
    %c0_i32_1 = arith.constant 0 : i32
    return %c0_i32, %c0_i32_0 : i32, i32
  }
  func.func @transform_4(%arg0: i32) -> (i32, i32) {
    %c0_i32 = arith.constant 0 : i32
    %c0_i32_0 = arith.constant 0 : i32
    return %arg0, %c0_i32 : i32, i32
  }
  func.func @transform_5(%arg0: i32) -> (i32, i32) {
    %c0_i32 = arith.constant 0 : i32
    %c0_i32_0 = arith.constant 0 : i32
    %c0_i32_1 = arith.constant 0 : i32
    return %c0_i32, %c0_i32_0 : i32, i32
  }
  func.func @transform_6(%arg0: i32) -> (i32, i32) {
    %c0_i32 = arith.constant 0 : i32
    %c0_i32_0 = arith.constant 0 : i32
    %c0_i32_1 = arith.constant 0 : i32
    return %c0_i32, %c0_i32_0 : i32, i32
  }
  func.func @transform_7(%arg0: i32) -> (i32, i32) {
    %c0_i32 = arith.constant 0 : i32
    %c0_i32_0 = arith.constant 0 : i32
    %c0_i32_1 = arith.constant 0 : i32
    return %c0_i32, %c0_i32_0 : i32, i32
  }
  func.func @transform_8(%arg0: i32) -> (i32, i32) {
    %c0_i32 = arith.constant 0 : i32
    %c0_i32_0 = arith.constant 0 : i32
    %c0_i32_1 = arith.constant 0 : i32
    return %c0_i32, %c0_i32_0 : i32, i32
  }
  func.func @transform_9(%arg0: i32) -> (i32, i32) {
    %c0_i32 = arith.constant 0 : i32
    %c0_i32_0 = arith.constant 0 : i32
    %c0_i32_1 = arith.constant 0 : i32
    return %c0_i32, %c0_i32_0 : i32, i32
  }
  func.func @transform_10(%arg0: i32) -> (i32, i32) {
    %c0_i32 = arith.constant 0 : i32
    %c0_i32_0 = arith.constant 0 : i32
    %c0_i32_1 = arith.constant 0 : i32
    return %c0_i32, %c0_i32_0 : i32, i32
  }
  func.func @transform_11(%arg0: i32) -> (i32, i32) {
    %c0_i32 = arith.constant 0 : i32
    %c0_i32_0 = arith.constant 0 : i32
    %c0_i32_1 = arith.constant 0 : i32
    return %c0_i32, %c0_i32_0 : i32, i32
  }
  func.func @transform_12(%arg0: i32) -> (i32, i32) {
    %c0_i32 = arith.constant 0 : i32
    %c0_i32_0 = arith.constant 0 : i32
    return %arg0, %c0_i32 : i32, i32
  }
}

module attributes {stable_mosaic.version = 11 : i64} {
  func.func @_matmul_bn_relu_kernel(%arg0: i32, %arg1: memref<128x117xbf16, #tpu.memory_space<vmem>>, %arg2: memref<117x13xbf16, #tpu.memory_space<vmem>>, %arg3: memref<1x13xf32, #tpu.memory_space<vmem>>, %arg4: memref<1x13xf32, #tpu.memory_space<vmem>>, %arg5: memref<128x13xbf16, #tpu.memory_space<vmem>>) attributes {dimension_semantics = [#tpu.dimension_semantics<parallel>], iteration_bounds = array<i64: 1>, scalar_prefetch = 0 : i64, scratch_operands = 0 : i64, tpu.core_type = #tpu.core_type<tc>, window_params = [{transform_indices = @transform_0, window_bounds = array<i64: 128, 117>}, {pipeline_mode = #tpu.pipeline_mode<synchronous>, transform_indices = @transform_1, window_bounds = array<i64: 117, 13>}, {pipeline_mode = #tpu.pipeline_mode<synchronous>, transform_indices = @transform_2, window_bounds = array<i64: 1, 13>}, {pipeline_mode = #tpu.pipeline_mode<synchronous>, transform_indices = @transform_3, window_bounds = array<i64: 1, 13>}, {transform_indices = @transform_4, window_bounds = array<i64: 128, 13>}]} {
    %c0 = arith.constant 0 : index
    %c0_0 = arith.constant 0 : index
    %0 = vector.load %arg1[%c0, %c0_0] : memref<128x117xbf16, #tpu.memory_space<vmem>>, vector<128x117xbf16>
    %c0_1 = arith.constant 0 : index
    %c0_2 = arith.constant 0 : index
    %1 = vector.load %arg2[%c0_1, %c0_2] : memref<117x13xbf16, #tpu.memory_space<vmem>>, vector<117x13xbf16>
    %cst = arith.constant dense<0.000000e+00> : vector<128x13xf32>
    %2 = tpu.matmul %0, %1, %cst {dimension_numbers = #tpu.dot_dimension_numbers<[1], [0], [0], [1], [0, 0, 1, 1], [], []>} : vector<128x117xbf16>, vector<117x13xbf16>, vector<128x13xf32> -> vector<128x13xf32>
    %c0_3 = arith.constant 0 : index
    %c0_4 = arith.constant 0 : index
    %3 = vector.load %arg3[%c0_3, %c0_4] : memref<1x13xf32, #tpu.memory_space<vmem>>, vector<1x13xf32>
    %4 = vector.broadcast %3 : vector<1x13xf32> to vector<128x13xf32>
    %5 = arith.mulf %2, %4 : vector<128x13xf32>
    %c0_5 = arith.constant 0 : index
    %c0_6 = arith.constant 0 : index
    %6 = vector.load %arg4[%c0_5, %c0_6] : memref<1x13xf32, #tpu.memory_space<vmem>>, vector<1x13xf32>
    %7 = vector.broadcast %6 : vector<1x13xf32> to vector<128x13xf32>
    %8 = arith.addf %5, %7 : vector<128x13xf32>
    %cst_7 = arith.constant 0.000000e+00 : f32
    %cst_8 = arith.constant 2.000000e+01 : f32
    %9 = vector.broadcast %cst_7 : f32 to vector<128x13xf32>
    %10 = arith.maximumf %9, %8 : vector<128x13xf32>
    %11 = vector.broadcast %cst_8 : f32 to vector<128x13xf32>
    %12 = arith.minimumf %11, %10 : vector<128x13xf32>
    %13 = arith.truncf %12 : vector<128x13xf32> to vector<128x13xbf16>
    %c0_9 = arith.constant 0 : index
    %c0_10 = arith.constant 0 : index
    %14 = vector.load %arg5[%c0_9, %c0_10] : memref<128x13xbf16, #tpu.memory_space<vmem>>, vector<128x13xbf16>
    tpu.vector_store %arg5[%c0_9, %c0_10], %13 {strides = array<i32>} : memref<128x13xbf16, #tpu.memory_space<vmem>>, vector<128x13xbf16>,
    return
  }
  func.func @transform_0(%arg0: i32) -> (i32, i32) {
    %c0_i32 = arith.constant 0 : i32
    %c0_i32_0 = arith.constant 0 : i32
    return %arg0, %c0_i32 : i32, i32
  }
  func.func @transform_1(%arg0: i32) -> (i32, i32) {
    %c0_i32 = arith.constant 0 : i32
    %c0_i32_0 = arith.constant 0 : i32
    %c0_i32_1 = arith.constant 0 : i32
    return %c0_i32, %c0_i32_0 : i32, i32
  }
  func.func @transform_2(%arg0: i32) -> (i32, i32) {
    %c0_i32 = arith.constant 0 : i32
    %c0_i32_0 = arith.constant 0 : i32
    %c0_i32_1 = arith.constant 0 : i32
    return %c0_i32, %c0_i32_0 : i32, i32
  }
  func.func @transform_3(%arg0: i32) -> (i32, i32) {
    %c0_i32 = arith.constant 0 : i32
    %c0_i32_0 = arith.constant 0 : i32
    %c0_i32_1 = arith.constant 0 : i32
    return %c0_i32, %c0_i32_0 : i32, i32
  }
  func.func @transform_4(%arg0: i32) -> (i32, i32) {
    %c0_i32 = arith.constant 0 : i32
    %c0_i32_0 = arith.constant 0 : i32
    return %arg0, %c0_i32 : i32, i32
  }
}

module attributes {stable_mosaic.version = 11 : i64} {
  func.func @_final_kernel(%arg0: i32, %arg1: memref<128x26xbf16, #tpu.memory_space<vmem>>, %arg2: memref<128x13xbf16, #tpu.memory_space<vmem>>, %arg3: memref<13x64xbf16, #tpu.memory_space<vmem>>, %arg4: memref<13x64xbf16, #tpu.memory_space<vmem>>, %arg5: memref<1x64xf32, #tpu.memory_space<vmem>>, %arg6: memref<1x64xf32, #tpu.memory_space<vmem>>, %arg7: memref<128x32xbf16, #tpu.memory_space<vmem>>, %arg8: memref<32x64xbf16, #tpu.memory_space<vmem>>, %arg9: memref<1x64xf32, #tpu.memory_space<vmem>>, %arg10: memref<1x64xf32, #tpu.memory_space<vmem>>, %arg11: memref<128x64xf32, #tpu.memory_space<vmem>>) attributes {dimension_semantics = [#tpu.dimension_semantics<parallel>], iteration_bounds = array<i64: 1>, scalar_prefetch = 0 : i64, scratch_operands = 0 : i64, tpu.core_type = #tpu.core_type<tc>, window_params = [{transform_indices = @transform_0, window_bounds = array<i64: 128, 26>}, {transform_indices = @transform_1, window_bounds = array<i64: 128, 13>}, {pipeline_mode = #tpu.pipeline_mode<synchronous>, transform_indices = @transform_2, window_bounds = array<i64: 13, 64>}, {pipeline_mode = #tpu.pipeline_mode<synchronous>, transform_indices = @transform_3, window_bounds = array<i64: 13, 64>}, {pipeline_mode = #tpu.pipeline_mode<synchronous>, transform_indices = @transform_4, window_bounds = array<i64: 1, 64>}, {pipeline_mode = #tpu.pipeline_mode<synchronous>, transform_indices = @transform_5, window_bounds = array<i64: 1, 64>}, {transform_indices = @transform_6, window_bounds = array<i64: 128, 32>}, {pipeline_mode = #tpu.pipeline_mode<synchronous>, transform_indices = @transform_7, window_bounds = array<i64: 32, 64>}, {pipeline_mode = #tpu.pipeline_mode<synchronous>, transform_indices = @transform_8, window_bounds = array<i64: 1, 64>}, {pipeline_mode = #tpu.pipeline_mode<synchronous>, transform_indices = @transform_9, window_bounds = array<i64: 1, 64>}, {transform_indices = @transform_10, window_bounds = array<i64: 128, 64>}]} {
    %c0 = arith.constant 0 : index
    %c0_0 = arith.constant 0 : index
    %0 = vector.load %arg1[%c0, %c0_0] : memref<128x26xbf16, #tpu.memory_space<vmem>>, vector<128x26xbf16>
    %1 = vector.extract_strided_slice %0 {offsets = [0, 0], sizes = [128, 13], strides = [1, 1]} : vector<128x26xbf16> to vector<128x13xbf16>
    %c0_1 = arith.constant 0 : index
    %c0_2 = arith.constant 0 : index
    %2 = vector.load %arg3[%c0_1, %c0_2] : memref<13x64xbf16, #tpu.memory_space<vmem>>, vector<13x64xbf16>
    %cst = arith.constant dense<0.000000e+00> : vector<128x64xf32>
    %3 = tpu.matmul %1, %2, %cst {dimension_numbers = #tpu.dot_dimension_numbers<[1], [0], [0], [1], [0, 0, 1, 1], [], []>} : vector<128x13xbf16>, vector<13x64xbf16>, vector<128x64xf32> -> vector<128x64xf32>
    %c0_3 = arith.constant 0 : index
    %c0_4 = arith.constant 0 : index
    %4 = vector.load %arg2[%c0_3, %c0_4] : memref<128x13xbf16, #tpu.memory_space<vmem>>, vector<128x13xbf16>
    %c0_5 = arith.constant 0 : index
    %c0_6 = arith.constant 0 : index
    %5 = vector.load %arg4[%c0_5, %c0_6] : memref<13x64xbf16, #tpu.memory_space<vmem>>, vector<13x64xbf16>
    %cst_7 = arith.constant dense<0.000000e+00> : vector<128x64xf32>
    %6 = tpu.matmul %4, %5, %cst_7 {dimension_numbers = #tpu.dot_dimension_numbers<[1], [0], [0], [1], [0, 0, 1, 1], [], []>} : vector<128x13xbf16>, vector<13x64xbf16>, vector<128x64xf32> -> vector<128x64xf32>
    %7 = arith.addf %3, %6 : vector<128x64xf32>
    %c0_8 = arith.constant 0 : index
    %c0_9 = arith.constant 0 : index
    %8 = vector.load %arg5[%c0_8, %c0_9] : memref<1x64xf32, #tpu.memory_space<vmem>>, vector<1x64xf32>
    %9 = vector.broadcast %8 : vector<1x64xf32> to vector<128x64xf32>
    %10 = arith.mulf %7, %9 : vector<128x64xf32>
    %c0_10 = arith.constant 0 : index
    %c0_11 = arith.constant 0 : index
    %11 = vector.load %arg6[%c0_10, %c0_11] : memref<1x64xf32, #tpu.memory_space<vmem>>, vector<1x64xf32>
    %12 = vector.broadcast %11 : vector<1x64xf32> to vector<128x64xf32>
    %13 = arith.addf %10, %12 : vector<128x64xf32>
    %c0_12 = arith.constant 0 : index
    %c0_13 = arith.constant 0 : index
    %14 = vector.load %arg7[%c0_12, %c0_13] : memref<128x32xbf16, #tpu.memory_space<vmem>>, vector<128x32xbf16>
    %c0_14 = arith.constant 0 : index
    %c0_15 = arith.constant 0 : index
    %15 = vector.load %arg8[%c0_14, %c0_15] : memref<32x64xbf16, #tpu.memory_space<vmem>>, vector<32x64xbf16>
    %cst_16 = arith.constant dense<0.000000e+00> : vector<128x64xf32>
    %16 = tpu.matmul %14, %15, %cst_16 {dimension_numbers = #tpu.dot_dimension_numbers<[1], [0], [0], [1], [0, 0, 1, 1], [], []>} : vector<128x32xbf16>, vector<32x64xbf16>, vector<128x64xf32> -> vector<128x64xf32>
    %c0_17 = arith.constant 0 : index
    %c0_18 = arith.constant 0 : index
    %17 = vector.load %arg9[%c0_17, %c0_18] : memref<1x64xf32, #tpu.memory_space<vmem>>, vector<1x64xf32>
    %18 = vector.broadcast %17 : vector<1x64xf32> to vector<128x64xf32>
    %19 = arith.mulf %16, %18 : vector<128x64xf32>
    %c0_19 = arith.constant 0 : index
    %c0_20 = arith.constant 0 : index
    %20 = vector.load %arg10[%c0_19, %c0_20] : memref<1x64xf32, #tpu.memory_space<vmem>>, vector<1x64xf32>
    %21 = vector.broadcast %20 : vector<1x64xf32> to vector<128x64xf32>
    %22 = arith.addf %19, %21 : vector<128x64xf32>
    %23 = arith.addf %13, %22 : vector<128x64xf32>
    %cst_21 = arith.constant 0.000000e+00 : f32
    %cst_22 = arith.constant 2.000000e+01 : f32
    %24 = vector.broadcast %cst_21 : f32 to vector<128x64xf32>
    %25 = arith.maximumf %24, %23 : vector<128x64xf32>
    %26 = vector.broadcast %cst_22 : f32 to vector<128x64xf32>
    %27 = arith.minimumf %26, %25 : vector<128x64xf32>
    %c0_23 = arith.constant 0 : index
    %c0_24 = arith.constant 0 : index
    %28 = vector.load %arg11[%c0_23, %c0_24] : memref<128x64xf32, #tpu.memory_space<vmem>>, vector<128x64xf32>
    tpu.vector_store %arg11[%c0_23, %c0_24], %27 {strides = array<i32>} : memref<128x64xf32, #tpu.memory_space<vmem>>, vector<128x64xf32>,
    return
  }
  func.func @transform_0(%arg0: i32) -> (i32, i32) {
    %c0_i32 = arith.constant 0 : i32
    %c0_i32_0 = arith.constant 0 : i32
    return %arg0, %c0_i32 : i32, i32
  }
  func.func @transform_1(%arg0: i32) -> (i32, i32) {
    %c0_i32 = arith.constant 0 : i32
    %c0_i32_0 = arith.constant 0 : i32
    return %arg0, %c0_i32 : i32, i32
  }
  func.func @transform_2(%arg0: i32) -> (i32, i32) {
    %c0_i32 = arith.constant 0 : i32
    %c0_i32_0 = arith.constant 0 : i32
    %c0_i32_1 = arith.constant 0 : i32
    return %c0_i32, %c0_i32_0 : i32, i32
  }
  func.func @transform_3(%arg0: i32) -> (i32, i32) {
    %c0_i32 = arith.constant 0 : i32
    %c0_i32_0 = arith.constant 0 : i32
    %c0_i32_1 = arith.constant 0 : i32
    return %c0_i32, %c0_i32_0 : i32, i32
  }
  func.func @transform_4(%arg0: i32) -> (i32, i32) {
    %c0_i32 = arith.constant 0 : i32
    %c0_i32_0 = arith.constant 0 : i32
    %c0_i32_1 = arith.constant 0 : i32
    return %c0_i32, %c0_i32_0 : i32, i32
  }
  func.func @transform_5(%arg0: i32) -> (i32, i32) {
    %c0_i32 = arith.constant 0 : i32
    %c0_i32_0 = arith.constant 0 : i32
    %c0_i32_1 = arith.constant 0 : i32
    return %c0_i32, %c0_i32_0 : i32, i32
  }
  func.func @transform_6(%arg0: i32) -> (i32, i32) {
    %c0_i32 = arith.constant 0 : i32
    %c0_i32_0 = arith.constant 0 : i32
    return %arg0, %c0_i32 : i32, i32
  }
  func.func @transform_7(%arg0: i32) -> (i32, i32) {
    %c0_i32 = arith.constant 0 : i32
    %c0_i32_0 = arith.constant 0 : i32
    %c0_i32_1 = arith.constant 0 : i32
    return %c0_i32, %c0_i32_0 : i32, i32
  }
  func.func @transform_8(%arg0: i32) -> (i32, i32) {
    %c0_i32 = arith.constant 0 : i32
    %c0_i32_0 = arith.constant 0 : i32
    %c0_i32_1 = arith.constant 0 : i32
    return %c0_i32, %c0_i32_0 : i32, i32
  }
  func.func @transform_9(%arg0: i32) -> (i32, i32) {
    %c0_i32 = arith.constant 0 : i32
    %c0_i32_0 = arith.constant 0 : i32
    %c0_i32_1 = arith.constant 0 : i32
    return %c0_i32, %c0_i32_0 : i32, i32
  }
  func.func @transform_10(%arg0: i32) -> (i32, i32) {
    %c0_i32 = arith.constant 0 : i32
    %c0_i32_0 = arith.constant 0 : i32
    return %arg0, %c0_i32 : i32, i32
  }
}

</mosaic_0001>

<bundles_post_ra>
// kernel: _lambda_.4
= control target key start
LH: loop header
LB: loop body
LE: loop exit
PB: predicated region body
PF: predicated region fallthrough
CT: control target
= control target key end

     0   :  { %vm90_vm0 = vcmask 261120   ;;  %vm354_vm1 = vcmask 207872   ;;  %s640_s1 = inlined_call_operand.vmem [shape: bf16[32,26], index: 1, kind: input, shape index: {}]   ;;  %s641_s0 = inlined_call_operand.vmem [shape: bf16[128,32], index: 0, kind: input, shape index: {}]   ;;  %s642_s2 = inlined_call_operand.vmem [shape: f32[1,26], index: 2, kind: input, shape index: {}]   ;;  %s643_s3 = inlined_call_operand.vmem [shape: f32[1,26], index: 3, kind: input, shape index: {}]   ;;  %s644_s4 = inlined_call_operand.vmem [shape: bf16[128,26], index: 4, kind: output, shape index: {}]  }
   0x1   :  { %v461_v0 = vld [vmem:[%s640_s1 + $0x8] sm:$0xff]   ;;  %v462_v1 = vld [vmem:[%s640_s1] sm:$0xff]   ;;  %v467_v6 = vld [vmem:[%s641_s0 + $0x10] sm:$0xff]  }
   0x2   :  { %437 = vmatprep.subr.bf16.mxu0 %v461_v0  ;;  %457 = vmatprep.subr.bf16.mxu1 %v461_v0  ;;  %v463_v2 = vld [vmem:[%s641_s0] sm:$0xff]   ;;  %v465_v4 = vld [vmem:[%s641_s0 + $0x8] sm:$0xff]   ;;  %v468_v7 = vld [vmem:[%s641_s0 + $0x30] sm:$0xff]  }
   0x3   :  { %438 = vmatpush3.bf16.msra.mxu0 %v461_v0  ;;  %459 = vmatpush3.bf16.msra.mxu1 %v461_v0  ;;  %v464_v3 = vld [vmem:[%s641_s0 + $0x20] sm:$0xff]   ;;  %v466_v5 = vld [vmem:[%s641_s0 + $0x28] sm:$0xff]   ;;  %v469_v8 = vld [vmem:[%s641_s0 + $0x18] sm:$0xff]  }
   0x4   :  { %439 = vmatprep.subr.bf16.mxu0 %v462_v1  ;;  %458 = vmatprep.subr.bf16.mxu1 %v462_v1  ;;  %v470_v9 = vld [vmem:[%s641_s0 + $0x38] sm:$0xff]   ;;  %v537_v10 = vld [vmem:[%s642_s2] ss:$0 sm:$0xff] }
   0x5   :  { %441 = vmatprep.mubr.msk.bf16.mxu0 %vm90_vm0, %v463_v2  ;;  %449 = vmatprep.mubr.msk.bf16.mxu1 %vm90_vm0, %v464_v3  ;;  %v542_v12 = vld [vmem:[%s643_s3] ss:$0 sm:$0xff] }
   0x7   :  { %440 = vmatpush3.bf16.msra.mxu0 %v462_v1  ;;  %460 = vmatpush3.bf16.msra.mxu1 %v462_v1 }
   0xa   :  { %442 = vmatmul.mubr.msk.bf16.vlgmr.msra.gmra.mxu0 %vm90_vm0, %v465_v4  ;;  %450 = vmatmul.mubr.msk.bf16.vlgmr.msra.gmra.mxu1 %vm90_vm0, %v466_v5 }
   0xb   :  { %445 = vmatprep.mubr.msk.bf16.mxu0 %vm90_vm0, %v467_v6  ;;  %453 = vmatprep.mubr.msk.bf16.mxu1 %vm90_vm0, %v468_v7 }
  0x12   :  { %446 = vmatmul.mubr.msk.bf16.gmra.mxu0 %vm90_vm0, %v469_v8  ;;  %454 = vmatmul.mubr.msk.bf16.gmra.mxu1 %vm90_vm0, %v470_v9 }
  0xca   :  { %v443_v11 = vpop.f32.mrf.mxu0  ;;  %v451_v13 = vpop.f32.mrf.mxu1 }
  0xcb   :  { %v221_v14 = vmul.f32 %v443_v11, %v537_v10  ;;  %v229_v15 = vmul.f32 %v451_v13, %v537_v10 }
  0xcc   :  { %v149_v16 = vpop.f32.mrf.mxu0  ;;  %v181_v17 = vpop.f32.mrf.mxu1 }
  0xcd   :  { %v244_v18 = vadd.f32 %v542_v12, %v221_v14  ;;  %v252_v19 = vadd.f32 %v542_v12, %v229_v15  ;;  %v219_v20 = vmul.f32 %v537_v10, %v149_v16  ;;  %v227_v21 = vmul.f32 %v537_v10, %v181_v17 }
  0xce   :  { %v444_v22 = vpop.f32.mrf.mxu0  ;;  %v452_v23 = vpop.f32.mrf.mxu1 }
  0xcf   :  { %v260_v24 = vmax.f32 %v244_v18, 0.0  ;;  %v268_v25 = vmax.f32 %v252_v19, 0.0  ;;  %v242_v26 = vadd.f32 %v542_v12, %v219_v20  ;;  %v250_v27 = vadd.f32 %v542_v12, %v227_v21 }
  0xd0   :  { %v222_v28 = vmul.f32 %v444_v22, %v537_v10  ;;  %v230_v29 = vmul.f32 %v452_v23, %v537_v10  ;;  %v152_v30 = vpop.f32.mrf.mxu0  ;;  %v184_v31 = vpop.f32.mrf.mxu1 }
  0xd1   :  { %v276_v32 = vmin.f32 %v260_v24, 20.0  ;;  %v284_v33 = vmin.f32 %v268_v25, 20.0  ;;  %v258_v34 = vmax.f32 %v242_v26, 0.0  ;;  %v266_v35 = vmax.f32 %v250_v27, 0.0 }
  0xd2   :  { %v245_v36 = vadd.f32 %v542_v12, %v222_v28  ;;  %v253_v37 = vadd.f32 %v542_v12, %v230_v29  ;;  %v220_v38 = vmul.f32 %v537_v10, %v152_v30  ;;  %v228_v39 = vmul.f32 %v537_v10, %v184_v31  ;;  %v447_v40 = vpop.f32.mrf.mxu0  ;;  %v455_v41 = vpop.f32.mrf.mxu1 }
  0xd3   :  { %v413_v42 = vpack.c.bf16 %v276_v32, %v276_v32  ;;  %v421_v43 = vpack.c.bf16 %v284_v33, %v284_v33  ;;  %v274_v44 = vmin.f32 %v258_v34, 20.0  ;;  %v282_v45 = vmin.f32 %v266_v35, 20.0 }
  0xd4   :  { %v261_v46 = vmax.f32 %v245_v36, 0.0  ;;  %v269_v47 = vmax.f32 %v253_v37, 0.0  ;;  %v243_v48 = vadd.f32 %v542_v12, %v220_v38  ;;  %v251_v49 = vadd.f32 %v542_v12, %v228_v39  ;;  %v165_v50 = vpop.f32.mrf.mxu0  ;;  %v197_v51 = vpop.f32.mrf.mxu1 }
  0xd5   :  { %357 = vst.msk [vmem:[%s644_s4 + $0x8] sm:$0xf] %vm354_vm1, %v413_v42  ;;  %365 = vst.msk [vmem:[%s644_s4 + $0x28] sm:$0xf] %vm354_vm1, %v421_v43  ;;  %v411_v52 = vpack.c.bf16 %v274_v44, %v274_v44  ;;  %v419_v53 = vpack.c.bf16 %v282_v45, %v282_v45  ;;  %v225_v54 = vmul.f32 %v447_v40, %v537_v10 }
  0xd6   :  { %v233_v55 = vmul.f32 %v455_v41, %v537_v10  ;;  %v277_v56 = vmin.f32 %v261_v46, 20.0  ;;  %v285_v57 = vmin.f32 %v269_v47, 20.0  ;;  %v259_v58 = vmax.f32 %v243_v48, 0.0  ;;  %v448_v60 = vpop.f32.mrf.mxu0  ;;  %v456_v61 = vpop.f32.mrf.mxu1 }
  0xd7   :  { %v267_v59 = vmax.f32 %v251_v49, 0.0  ;;  %355 = vst.msk [vmem:[%s644_s4] sm:$0xf] %vm354_vm1, %v411_v52  ;;  %363 = vst.msk [vmem:[%s644_s4 + $0x20] sm:$0xf] %vm354_vm1, %v419_v53  ;;  %v248_v62 = vadd.f32 %v542_v12, %v225_v54  ;;  %v223_v0 = vmul.f32 %v537_v10, %v165_v50  ;;  %v231_v1 = vmul.f32 %v537_v10, %v197_v51 }
  0xd8   :  { %v256_v63 = vadd.f32 %v542_v12, %v233_v55  ;;  %v414_v2 = vpack.c.bf16 %v277_v56, %v277_v56  ;;  %v422_v3 = vpack.c.bf16 %v285_v57, %v285_v57  ;;  %v275_v4 = vmin.f32 %v259_v58, 20.0  ;;  %v168_v11 = vpop.f32.mrf.mxu0  ;;  %v200_v13 = vpop.f32.mrf.mxu1 }
  0xd9   :  { %v283_v5 = vmin.f32 %v267_v59, 20.0  ;;  %v264_v6 = vmax.f32 %v248_v62, 0.0  ;;  %v246_v8 = vadd.f32 %v542_v12, %v223_v0  ;;  %v254_v9 = vadd.f32 %v542_v12, %v231_v1 }
  0xda   :  { %v272_v7 = vmax.f32 %v256_v63, 0.0  ;;  %358 = vst.msk [vmem:[%s644_s4 + $0xc] sm:$0xf] %vm354_vm1, %v414_v2  ;;  %366 = vst.msk [vmem:[%s644_s4 + $0x2c] sm:$0xf] %vm354_vm1, %v422_v3  ;;  %v412_v14 = vpack.c.bf16 %v275_v4, %v275_v4  ;;  %v226_v16 = vmul.f32 %v448_v60, %v537_v10  ;;  %v234_v17 = vmul.f32 %v456_v61, %v537_v10 }
  0xdb   :  { %v420_v15 = vpack.c.bf16 %v283_v5, %v283_v5  ;;  %v280_v18 = vmin.f32 %v264_v6, 20.0  ;;  %v262_v20 = vmax.f32 %v246_v8, 0.0  ;;  %v270_v21 = vmax.f32 %v254_v9, 0.0 }
  0xdc   :  { %v288_v19 = vmin.f32 %v272_v7, 20.0  ;;  %356 = vst.msk [vmem:[%s644_s4 + $0x4] sm:$0xf] %vm354_vm1, %v412_v14  ;;  %v249_v22 = vadd.f32 %v542_v12, %v226_v16  ;;  %v257_v23 = vadd.f32 %v542_v12, %v234_v17  ;;  %v224_v24 = vmul.f32 %v537_v10, %v168_v11 }
  0xdd   :  { %364 = vst.msk [vmem:[%s644_s4 + $0x24] sm:$0xf] %vm354_vm1, %v420_v15  ;;  %v232_v25 = vmul.f32 %v537_v10, %v200_v13  ;;  %v417_v26 = vpack.c.bf16 %v280_v18, %v280_v18  ;;  %v278_v28 = vmin.f32 %v262_v20, 20.0  ;;  %v286_v29 = vmin.f32 %v270_v21, 20.0 }
  0xde   :  { %v425_v27 = vpack.c.bf16 %v288_v19, %v288_v19  ;;  %v265_v30 = vmax.f32 %v249_v22, 0.0  ;;  %v273_v31 = vmax.f32 %v257_v23, 0.0  ;;  %v247_v32 = vadd.f32 %v542_v12, %v224_v24 }
  0xdf   :  { %v255_v33 = vadd.f32 %v542_v12, %v232_v25  ;;  %361 = vst.msk [vmem:[%s644_s4 + $0x18] sm:$0xf] %vm354_vm1, %v417_v26  ;;  %v415_v10 = vpack.c.bf16 %v278_v28, %v278_v28  ;;  %v423_v34 = vpack.c.bf16 %v286_v29, %v286_v29 }
  0xe0   :  { %369 = vst.msk [vmem:[%s644_s4 + $0x38] sm:$0xf] %vm354_vm1, %v425_v27  ;;  %v281_v35 = vmin.f32 %v265_v30, 20.0  ;;  %v289_v36 = vmin.f32 %v273_v31, 20.0  ;;  %v263_v37 = vmax.f32 %v247_v32, 0.0 }
  0xe1   :  { %v271_v38 = vmax.f32 %v255_v33, 0.0  ;;  %359 = vst.msk [vmem:[%s644_s4 + $0x10] sm:$0xf] %vm354_vm1, %v415_v10  ;;  %367 = vst.msk [vmem:[%s644_s4 + $0x30] sm:$0xf] %vm354_vm1, %v423_v34 }
  0xe2   :  { %v418_v12 = vpack.c.bf16 %v281_v35, %v281_v35  ;;  %v426_v39 = vpack.c.bf16 %v289_v36, %v289_v36  ;;  %v279_v40 = vmin.f32 %v263_v37, 20.0 }
  0xe3   :  { %v287_v41 = vmin.f32 %v271_v38, 20.0 }
  0xe4   :  { %362 = vst.msk [vmem:[%s644_s4 + $0x1c] sm:$0xf] %vm354_vm1, %v418_v12  ;;  %370 = vst.msk [vmem:[%s644_s4 + $0x3c] sm:$0xf] %vm354_vm1, %v426_v39  ;;  %v416_v42 = vpack.c.bf16 %v279_v40, %v279_v40 }
  0xe5   :  { %v424_v43 = vpack.c.bf16 %v287_v41, %v287_v41 }
  0xe6   :  { %360 = vst.msk [vmem:[%s644_s4 + $0x14] sm:$0xf] %vm354_vm1, %v416_v42 }
  0xe7   :  { %368 = vst.msk [vmem:[%s644_s4 + $0x34] sm:$0xf] %vm354_vm1, %v424_v43 }

// kernel: _lambda_.6
= control target key start
LH: loop header
LB: loop body
LE: loop exit
PB: predicated region body
PF: predicated region fallthrough
CT: control target
= control target key end

     0   :  { %vm159_vm0 = vcmask 1041408   ;;  %vm160_vm1 = vcmask 1042432   ;;  %v565_v1 = vmov 65535   ;;  %vm134_vm2 = vcmask 957440   ;;  %s753_s1 = inlined_call_operand.vmem [shape: bf16[117,13], index: 1, kind: input, shape index: {}]   ;;  %s754_s0 = inlined_call_operand.vmem [shape: bf16[128,117], index: 0, kind: input, shape index: {}]   ;;  %s755_s2 = inlined_call_operand.vmem [shape: f32[1,13], index: 2, kind: input, shape index: {}]   ;;  %s756_s3 = inlined_call_operand.vmem [shape: f32[1,13], index: 3, kind: input, shape index: {}]   ;;  %s757_s4 = inlined_call_operand.vmem [shape: bf16[128,13], index: 4, kind: output, shape index: {}]  }
   0x1   :  { %v549_v0 = vld [vmem:[%s753_s1 + $0x38] ss:$0 sps:$4 sm:$0x77]   ;;  %v161_v2 = vsel %vm159_vm0, 4294967295, %v565_v1  ;;  %v550_v5 = vld [vmem:[%s753_s1 + $0x30] sm:$0xff]   ;;  %v551_v6 = vld [vmem:[%s753_s1 + $0x28] sm:$0xff]  }
   0x2   :  { %v162_v3 = vsel %vm160_vm1, %v161_v2, 0  ;;  %v557_v7 = vld [vmem:[%s754_s0] sm:$0xff]   ;;  %v553_v10 = vld [vmem:[%s753_s1 + $0x18] sm:$0xff]   ;;  %v554_v11 = vld [vmem:[%s753_s1 + $0x10] sm:$0xff]   ;;  %vm405_vm3 = vcmask 101376  }
   0x3   :  { %v164_v4 = vand.u32 %v549_v0, %v162_v3  ;;  %v558_v8 = vld [vmem:[%s754_s0 + $0x20] sm:$0xff]   ;;  %516 = vmatprep.mubr.msk.bf16.mxu0 %vm134_vm2, %v557_v7  ;;  %v555_v12 = vld [vmem:[%s753_s1 + $0x8] sm:$0xff]   ;;  %v561_v16 = vld [vmem:[%s754_s0 + $0x10] sm:$0xff]  }
   0x4   :  { %v552_v9 = vld [vmem:[%s753_s1 + $0x20] sm:$0xff]   ;;  %524 = vmatprep.mubr.msk.bf16.mxu1 %vm134_vm2, %v558_v8  ;;  %v559_v14 = vld [vmem:[%s754_s0 + $0x8] sm:$0xff]   ;;  %v562_v17 = vld [vmem:[%s754_s0 + $0x30] sm:$0xff]  }
   0x5   :  { %500 = vmatprep.subr.bf16.mxu0 %v164_v4  ;;  %532 = vmatprep.subr.bf16.mxu1 %v164_v4  ;;  %v556_v13 = vld [vmem:[%s753_s1] sm:$0xff]   ;;  %v560_v15 = vld [vmem:[%s754_s0 + $0x28] sm:$0xff]   ;;  %v563_v18 = vld [vmem:[%s754_s0 + $0x18] sm:$0xff]  }
   0x6   :  { %501 = vmatpush3.bf16.msra.mxu0 %v164_v4  ;;  %540 = vmatpush3.bf16.msra.mxu1 %v164_v4  ;;  %v564_v19 = vld [vmem:[%s754_s0 + $0x38] sm:$0xff]   ;;  %v650_v20 = vld [vmem:[%s755_s2] ss:$0 sm:$0xff] }
   0x7   :  { %502 = vmatprep.subr.bf16.mxu0 %v550_v5  ;;  %533 = vmatprep.subr.bf16.mxu1 %v550_v5  ;;  %v655_v22 = vld [vmem:[%s756_s3] ss:$0 sm:$0xff] }
   0xa   :  { %503 = vmatpush3.bf16.msra.mxu0 %v550_v5  ;;  %541 = vmatpush3.bf16.msra.mxu1 %v550_v5 }
   0xb   :  { %504 = vmatprep.subr.bf16.mxu0 %v551_v6  ;;  %534 = vmatprep.subr.bf16.mxu1 %v551_v6 }
   0xe   :  { %505 = vmatpush3.bf16.msra.mxu0 %v551_v6  ;;  %542 = vmatpush3.bf16.msra.mxu1 %v551_v6 }
   0xf   :  { %506 = vmatprep.subr.bf16.mxu0 %v552_v9  ;;  %535 = vmatprep.subr.bf16.mxu1 %v552_v9 }
  0x12   :  { %507 = vmatpush3.bf16.msra.mxu0 %v552_v9  ;;  %543 = vmatpush3.bf16.msra.mxu1 %v552_v9 }
  0x13   :  { %508 = vmatprep.subr.bf16.mxu0 %v553_v10  ;;  %536 = vmatprep.subr.bf16.mxu1 %v553_v10 }
  0x16   :  { %509 = vmatpush3.bf16.msra.mxu0 %v553_v10  ;;  %544 = vmatpush3.bf16.msra.mxu1 %v553_v10 }
  0x17   :  { %510 = vmatprep.subr.bf16.mxu0 %v554_v11  ;;  %537 = vmatprep.subr.bf16.mxu1 %v554_v11 }
  0x1a   :  { %511 = vmatpush3.bf16.msra.mxu0 %v554_v11  ;;  %545 = vmatpush3.bf16.msra.mxu1 %v554_v11 }
  0x1b   :  { %512 = vmatprep.subr.bf16.mxu0 %v555_v12  ;;  %538 = vmatprep.subr.bf16.mxu1 %v555_v12 }
  0x1e   :  { %513 = vmatpush3.bf16.msra.mxu0 %v555_v12  ;;  %546 = vmatpush3.bf16.msra.mxu1 %v555_v12 }
  0x1f   :  { %514 = vmatprep.subr.bf16.mxu0 %v556_v13  ;;  %539 = vmatprep.subr.bf16.mxu1 %v556_v13 }
  0x22   :  { %515 = vmatpush3.bf16.msra.mxu0 %v556_v13  ;;  %547 = vmatpush3.bf16.msra.mxu1 %v556_v13 }
  0x25   :  { %517 = vmatmul.mubr.msk.bf16.vlgmr.msra.gmra.mxu0 %vm134_vm2, %v559_v14  ;;  %525 = vmatmul.mubr.msk.bf16.vlgmr.msra.gmra.mxu1 %vm134_vm2, %v560_v15 }
  0x26   :  { %520 = vmatprep.mubr.msk.bf16.mxu0 %vm134_vm2, %v561_v16  ;;  %528 = vmatprep.mubr.msk.bf16.mxu1 %vm134_vm2, %v562_v17 }
  0x2d   :  { %521 = vmatmul.mubr.msk.bf16.gmra.mxu0 %vm134_vm2, %v563_v18  ;;  %529 = vmatmul.mubr.msk.bf16.gmra.mxu1 %vm134_vm2, %v564_v19 }
  0xe5   :  { %v518_v21 = vpop.f32.mrf.mxu0  ;;  %v526_v23 = vpop.f32.mrf.mxu1 }
  0xe6   :  { %v272_v24 = vmul.f32 %v518_v21, %v650_v20  ;;  %v280_v25 = vmul.f32 %v526_v23, %v650_v20 }
  0xe7   :  { %v200_v26 = vpop.f32.mrf.mxu0  ;;  %v232_v27 = vpop.f32.mrf.mxu1 }
  0xe8   :  { %v295_v28 = vadd.f32 %v655_v22, %v272_v24  ;;  %v303_v29 = vadd.f32 %v655_v22, %v280_v25  ;;  %v270_v30 = vmul.f32 %v650_v20, %v200_v26  ;;  %v278_v31 = vmul.f32 %v650_v20, %v232_v27 }
  0xe9   :  { %v519_v32 = vpop.f32.mrf.mxu0  ;;  %v527_v33 = vpop.f32.mrf.mxu1 }
  0xea   :  { %v311_v34 = vmax.f32 %v295_v28, 0.0  ;;  %v319_v35 = vmax.f32 %v303_v29, 0.0  ;;  %v293_v36 = vadd.f32 %v655_v22, %v270_v30  ;;  %v301_v37 = vadd.f32 %v655_v22, %v278_v31 }
  0xeb   :  { %v273_v38 = vmul.f32 %v519_v32, %v650_v20  ;;  %v281_v39 = vmul.f32 %v527_v33, %v650_v20  ;;  %v203_v40 = vpop.f32.mrf.mxu0  ;;  %v235_v41 = vpop.f32.mrf.mxu1 }
  0xec   :  { %v327_v42 = vmin.f32 %v311_v34, 20.0  ;;  %v335_v43 = vmin.f32 %v319_v35, 20.0  ;;  %v309_v44 = vmax.f32 %v293_v36, 0.0  ;;  %v317_v45 = vmax.f32 %v301_v37, 0.0 }
  0xed   :  { %v296_v46 = vadd.f32 %v655_v22, %v273_v38  ;;  %v304_v47 = vadd.f32 %v655_v22, %v281_v39  ;;  %v271_v48 = vmul.f32 %v650_v20, %v203_v40  ;;  %v279_v49 = vmul.f32 %v650_v20, %v235_v41  ;;  %v522_v50 = vpop.f32.mrf.mxu0  ;;  %v530_v51 = vpop.f32.mrf.mxu1 }
  0xee   :  { %v470_v52 = vpack.c.bf16 %v327_v42, %v327_v42  ;;  %v478_v53 = vpack.c.bf16 %v335_v43, %v335_v43  ;;  %v325_v54 = vmin.f32 %v309_v44, 20.0  ;;  %v333_v55 = vmin.f32 %v317_v45, 20.0 }
  0xef   :  { %v312_v56 = vmax.f32 %v296_v46, 0.0  ;;  %v320_v57 = vmax.f32 %v304_v47, 0.0  ;;  %v294_v58 = vadd.f32 %v655_v22, %v271_v48  ;;  %v302_v59 = vadd.f32 %v655_v22, %v279_v49  ;;  %v216_v60 = vpop.f32.mrf.mxu0  ;;  %v248_v61 = vpop.f32.mrf.mxu1 }
  0xf0   :  { %408 = vst.msk [vmem:[%s757_s4 + $0x8] sm:$0xf] %vm405_vm3, %v470_v52  ;;  %416 = vst.msk [vmem:[%s757_s4 + $0x28] sm:$0xf] %vm405_vm3, %v478_v53  ;;  %v468_v62 = vpack.c.bf16 %v325_v54, %v325_v54  ;;  %v476_v63 = vpack.c.bf16 %v333_v55, %v333_v55  ;;  %v276_v0 = vmul.f32 %v522_v50, %v650_v20 }
  0xf1   :  { %v284_v1 = vmul.f32 %v530_v51, %v650_v20  ;;  %v328_v2 = vmin.f32 %v312_v56, 20.0  ;;  %v336_v3 = vmin.f32 %v320_v57, 20.0  ;;  %v310_v4 = vmax.f32 %v294_v58, 0.0  ;;  %v523_v6 = vpop.f32.mrf.mxu0  ;;  %v531_v7 = vpop.f32.mrf.mxu1 }
  0xf2   :  { %v318_v5 = vmax.f32 %v302_v59, 0.0  ;;  %406 = vst.msk [vmem:[%s757_s4] sm:$0xf] %vm405_vm3, %v468_v62  ;;  %414 = vst.msk [vmem:[%s757_s4 + $0x20] sm:$0xf] %vm405_vm3, %v476_v63  ;;  %v299_v8 = vadd.f32 %v655_v22, %v276_v0  ;;  %v274_v10 = vmul.f32 %v650_v20, %v216_v60  ;;  %v282_v11 = vmul.f32 %v650_v20, %v248_v61 }
  0xf3   :  { %v307_v9 = vadd.f32 %v655_v22, %v284_v1  ;;  %v471_v12 = vpack.c.bf16 %v328_v2, %v328_v2  ;;  %v479_v13 = vpack.c.bf16 %v336_v3, %v336_v3  ;;  %v326_v14 = vmin.f32 %v310_v4, 20.0  ;;  %v219_v21 = vpop.f32.mrf.mxu0  ;;  %v251_v23 = vpop.f32.mrf.mxu1 }
  0xf4   :  { %v334_v15 = vmin.f32 %v318_v5, 20.0  ;;  %v315_v16 = vmax.f32 %v299_v8, 0.0  ;;  %v297_v18 = vadd.f32 %v655_v22, %v274_v10  ;;  %v305_v19 = vadd.f32 %v655_v22, %v282_v11 }
  0xf5   :  { %v323_v17 = vmax.f32 %v307_v9, 0.0  ;;  %409 = vst.msk [vmem:[%s757_s4 + $0xc] sm:$0xf] %vm405_vm3, %v471_v12  ;;  %417 = vst.msk [vmem:[%s757_s4 + $0x2c] sm:$0xf] %vm405_vm3, %v479_v13  ;;  %v469_v24 = vpack.c.bf16 %v326_v14, %v326_v14  ;;  %v277_v26 = vmul.f32 %v523_v6, %v650_v20  ;;  %v285_v27 = vmul.f32 %v531_v7, %v650_v20 }
  0xf6   :  { %v477_v25 = vpack.c.bf16 %v334_v15, %v334_v15  ;;  %v331_v28 = vmin.f32 %v315_v16, 20.0  ;;  %v313_v30 = vmax.f32 %v297_v18, 0.0  ;;  %v321_v31 = vmax.f32 %v305_v19, 0.0 }
  0xf7   :  { %v339_v29 = vmin.f32 %v323_v17, 20.0  ;;  %407 = vst.msk [vmem:[%s757_s4 + $0x4] sm:$0xf] %vm405_vm3, %v469_v24  ;;  %v300_v32 = vadd.f32 %v655_v22, %v277_v26  ;;  %v308_v33 = vadd.f32 %v655_v22, %v285_v27  ;;  %v275_v34 = vmul.f32 %v650_v20, %v219_v21 }
  0xf8   :  { %415 = vst.msk [vmem:[%s757_s4 + $0x24] sm:$0xf] %vm405_vm3, %v477_v25  ;;  %v283_v35 = vmul.f32 %v650_v20, %v251_v23  ;;  %v474_v36 = vpack.c.bf16 %v331_v28, %v331_v28  ;;  %v329_v38 = vmin.f32 %v313_v30, 20.0  ;;  %v337_v39 = vmin.f32 %v321_v31, 20.0 }
  0xf9   :  { %v482_v37 = vpack.c.bf16 %v339_v29, %v339_v29  ;;  %v316_v40 = vmax.f32 %v300_v32, 0.0  ;;  %v324_v41 = vmax.f32 %v308_v33, 0.0  ;;  %v298_v42 = vadd.f32 %v655_v22, %v275_v34 }
  0xfa   :  { %v306_v43 = vadd.f32 %v655_v22, %v283_v35  ;;  %412 = vst.msk [vmem:[%s757_s4 + $0x18] sm:$0xf] %vm405_vm3, %v474_v36  ;;  %v472_v20 = vpack.c.bf16 %v329_v38, %v329_v38  ;;  %v480_v44 = vpack.c.bf16 %v337_v39, %v337_v39 }
  0xfb   :  { %420 = vst.msk [vmem:[%s757_s4 + $0x38] sm:$0xf] %vm405_vm3, %v482_v37  ;;  %v332_v45 = vmin.f32 %v316_v40, 20.0  ;;  %v340_v46 = vmin.f32 %v324_v41, 20.0  ;;  %v314_v47 = vmax.f32 %v298_v42, 0.0 }
  0xfc   :  { %v322_v48 = vmax.f32 %v306_v43, 0.0  ;;  %410 = vst.msk [vmem:[%s757_s4 + $0x10] sm:$0xf] %vm405_vm3, %v472_v20  ;;  %418 = vst.msk [vmem:[%s757_s4 + $0x30] sm:$0xf] %vm405_vm3, %v480_v44 }
  0xfd   :  { %v475_v22 = vpack.c.bf16 %v332_v45, %v332_v45  ;;  %v483_v49 = vpack.c.bf16 %v340_v46, %v340_v46  ;;  %v330_v50 = vmin.f32 %v314_v47, 20.0 }
  0xfe   :  { %v338_v51 = vmin.f32 %v322_v48, 20.0 }
  0xff   :  { %413 = vst.msk [vmem:[%s757_s4 + $0x1c] sm:$0xf] %vm405_vm3, %v475_v22  ;;  %421 = vst.msk [vmem:[%s757_s4 + $0x3c] sm:$0xf] %vm405_vm3, %v483_v49  ;;  %v473_v52 = vpack.c.bf16 %v330_v50, %v330_v50 }
 0x100   :  { %v481_v53 = vpack.c.bf16 %v338_v51, %v338_v51 }
 0x101   :  { %411 = vst.msk [vmem:[%s757_s4 + $0x14] sm:$0xf] %vm405_vm3, %v473_v52 }
 0x102   :  { %419 = vst.msk [vmem:[%s757_s4 + $0x34] sm:$0xf] %vm405_vm3, %v481_v53 }

// kernel: _lambda_.7
= control target key start
LH: loop header
LB: loop body
LE: loop exit
PB: predicated region body
PF: predicated region fallthrough
CT: control target
= control target key end

     0   :  { %vm143_vm0 = vcmask 1045504   ;;  %vm144_vm1 = vcmask 1046528   ;;  %v979_v2 = vmov 65535   ;;  %vm118_vm2 = vcmask 105472   ;;  %s1276_s0 = inlined_call_operand.vmem [shape: bf16[128,26], index: 0, kind: input, shape index: {}]   ;;  %s1277_s1 = inlined_call_operand.vmem [shape: bf16[128,13], index: 1, kind: input, shape index: {}]   ;;  %s1278_s2 = inlined_call_operand.vmem [shape: bf16[13,64], index: 2, kind: input, shape index: {}]   ;;  %s1279_s3 = inlined_call_operand.vmem [shape: bf16[13,64], index: 3, kind: input, shape index: {}]   ;;  %s1280_s4 = inlined_call_operand.vmem [shape: f32[1,64], index: 4, kind: input, shape index: {}]   ;;  %s1281_s5 = inlined_call_operand.vmem [shape: f32[1,64], index: 5, kind: input, shape index: {}]   ;;  %s1282_s6 = inlined_call_operand.vmem [shape: bf16[128,32], index: 6, kind: input, shape index: {}]   ;;  %s1283_s7 = inlined_call_operand.vmem [shape: bf16[32,64], index: 7, kind: input, shape index: {}]   ;;  %s1284_s8 = inlined_call_operand.vmem [shape: f32[1,64], index: 8, kind: input, shape index: {}]   ;;  %s1285_s9 = inlined_call_operand.vmem [shape: f32[1,64], index: 9, kind: input, shape index: {}]   ;;  %s1286_s10 = inlined_call_operand.hbm [shape: f32[128,64], index: 10, kind: output, shape index: {}]  }
   0x1   :  { %v929_v0 = vld [vmem:[%s1279_s3] sm:$0x7f]   ;;  %v145_v3 = vsel %vm143_vm0, 4294967295, %v979_v2  ;;  %v932_v7 = vld [vmem:[%s1277_s1 + $0x8] sm:$0xff]   ;;  %v936_v12 = vld [vmem:[%s1277_s1 + $0x10] sm:$0xff]   ;;  %vm534_vm3 = vcmask 261120  }
   0x2   :  { %v930_v1 = vld [vmem:[%s1277_s1] sm:$0xff]   ;;  %v146_v4 = vsel %vm144_vm1, %v145_v3, 0  ;;  %v933_v8 = vld [vmem:[%s1277_s1 + $0x28] sm:$0xff]   ;;  %v937_v13 = vld [vmem:[%s1277_s1 + $0x30] sm:$0xff]  }
   0x3   :  { %869 = vmatprep.mubr.msk.bf16.mxu0 %vm118_vm2, %v930_v1  ;;  %v931_v5 = vld [vmem:[%s1277_s1 + $0x20] sm:$0xff]   ;;  %v148_v6 = vand.u32 %v929_v0, %v146_v4  ;;  %v935_v10 = vld [vmem:[%s1283_s7 + $0x8] sm:$0xff]   ;;  %v938_v14 = vld [vmem:[%s1277_s1 + $0x18] sm:$0xff]  }
   0x4   :  { %877 = vmatprep.mubr.msk.bf16.mxu1 %vm118_vm2, %v931_v5  ;;  %v934_v9 = vld [vmem:[%s1278_s2] sm:$0x7f]   ;;  %v939_v16 = vld [vmem:[%s1277_s1 + $0x38] sm:$0xff]   ;;  %v943_v19 = vld [vmem:[%s1276_s0 + $0x8] sm:$0xff]  }
   0x5   :  { %867 = vmatprep.subr.bf16.mxu0 %v148_v6  ;;  %923 = vmatprep.subr.bf16.mxu1 %v148_v6  ;;  %v317_v11 = vand.u32 %v934_v9, %v146_v4  ;;  %v940_v15 = vld [vmem:[%s1283_s7] sm:$0xff]   ;;  %v944_v20 = vld [vmem:[%s1282_s6 + $0x8] sm:$0xff]   ;;  %v945_v21 = vld [vmem:[%s1276_s0 + $0x10] sm:$0xff]  }
   0x6   :  { %868 = vmatpush3.bf16.msra.mxu0 %v148_v6  ;;  %924 = vmatpush3.bf16.msra.mxu1 %v148_v6  ;;  %v941_v17 = vld [vmem:[%s1276_s0] sm:$0xff]   ;;  %v946_v22 = vld [vmem:[%s1282_s6 + $0x10] sm:$0xff]  }
   0x7   :  { %903 = vmatprep.subr.bf16.mxu0 %v935_v10  ;;  %885 = vmatprep.subr.bf16.mxu1 %v317_v11  ;;  %v942_v18 = vld [vmem:[%s1282_s6] sm:$0xff]  }
   0x9   :  { %870 = vmatmul.mubr.msk.bf16.vlgmr.msra.gmra.mxu0 %vm118_vm2, %v932_v7  ;;  %878 = vmatmul.mubr.msk.bf16.vlgmr.msra.gmra.mxu1 %vm118_vm2, %v933_v8 }
   0xa   :  { %904 = vmatpush3.bf16.msra.mxu0 %v935_v10  ;;  %886 = vmatpush3.bf16.msra.mxu1 %v317_v11 }
   0xb   :  { %873 = vmatprep.mubr.msk.bf16.mxu0 %vm118_vm2, %v936_v12  ;;  %881 = vmatprep.mubr.msk.bf16.mxu1 %vm118_vm2, %v937_v13 }
   0xc   :  { %905 = vmatprep.subr.bf16.mxu0 %v940_v15 }
   0xe   :  { %906 = vmatpush3.bf16.msra.mxu0 %v940_v15 }
  0x11   :  { %874 = vmatmul.mubr.msk.bf16.gmra.mxu0 %vm118_vm2, %v938_v14  ;;  %882 = vmatmul.mubr.msk.bf16.gmra.mxu1 %vm118_vm2, %v939_v16 }
  0x12   :  { %887 = vmatprep.mubr.msk.bf16.mxu1 %vm118_vm2, %v941_v17  ;;  %907 = vmatprep.mubr.msk.bf16.mxu0 %vm534_vm3, %v942_v18 }
  0x19   :  { %888 = vmatmul.mubr.msk.bf16.vlgmr.msra.gmra.mxu1 %vm118_vm2, %v943_v19  ;;  %908 = vmatmul.mubr.msk.bf16.vlgmr.msra.gmra.mxu0 %vm534_vm3, %v944_v20 }
  0x1a   :  { %891 = vmatprep.mubr.msk.bf16.mxu1 %vm118_vm2, %v945_v21  ;;  %911 = vmatprep.mubr.msk.bf16.mxu0 %vm534_vm3, %v946_v22 }
  0x1b   :  { %15 = vsyncpa [#allocation3], 0  ;;  %v947_v23 = vld [vmem:[%s1276_s0 + $0x18] sm:$0xff]   ;;  %v949_v25 = vld [vmem:[%s1276_s0 + $0x20] sm:$0xff]   ;;  %vm750_vm4 = vcmask 523264  }
  0x1c   :  { %v948_v24 = vld [vmem:[%s1282_s6 + $0x18] sm:$0xff]   ;;  %v950_v26 = vld [vmem:[%s1282_s6 + $0x20] sm:$0xff]   ;;  %v951_v27 = vld [vmem:[%s1276_s0 + $0x28] sm:$0xff]  }
  0x1d   :  { %v952_v28 = vld [vmem:[%s1282_s6 + $0x28] sm:$0xff]   ;;  %v953_v29 = vld [vmem:[%s1276_s0 + $0x30] sm:$0xff]   ;;  %v955_v31 = vld [vmem:[%s1276_s0 + $0x38] sm:$0xff]  }
  0x1e   :  { %v954_v30 = vld [vmem:[%s1282_s6 + $0x30] sm:$0xff]   ;;  %v956_v32 = vld [vmem:[%s1282_s6 + $0x38] sm:$0xff]   ;;  %v1167_v49 = vld [vmem:[%s1284_s8] ss:$0 sm:$0xff] }
  0x1f   :  { %v1172_v51 = vld [vmem:[%s1280_s4] ss:$0 sm:$0xff]  ;;  %s980_s4 = smov [#allocation2]  }
  0x20   :  { %v1177_v53 = vld [vmem:[%s1285_s9] ss:$0 sm:$0xff] }
  0x21   :  { %892 = vmatmul.mubr.msk.bf16.gmra.mxu1 %vm118_vm2, %v947_v23  ;;  %912 = vmatmul.mubr.msk.bf16.gmra.mxu0 %vm534_vm3, %v948_v24  ;;  %v1183_v56 = vld [vmem:[%s1281_s5] ss:$0 sm:$0xff]  ;;  %s772_s5 = sshll.u32 %s980_s4, 4  ;;  %s773_s5 = int_to_ptr.vmem [resolvable:$true] %s772_s5 }
  0x22   :  { %895 = vmatprep.mubr.msk.bf16.mxu1 %vm118_vm2, %v949_v25  ;;  %915 = vmatprep.mubr.msk.bf16.mxu0 %vm534_vm3, %v950_v26  ;;  %s957_s8 = scalar_lea.vmem %s773_s5, 2048  ;;  %p962_p1 = scmp.lt.s32.totalorder %s773_s5, %s773_s5 }
  0x23   :  { %p958_p0 = scmp.ne.s32.totalorder %s773_s5, %s957_s8  ;;  %p963_p2 = scmp.lt.s32.totalorder %s957_s8, %s957_s8 }
  0x25   :  { %p964_p3 = por %p963_p2, %p962_p1 }
  0x27   :  { %p965_p4 = pnand %p964_p3, %p958_p0 }
  0x29   :  { %896 = vmatmul.mubr.msk.bf16.gmra.mxu1 %vm118_vm2, %v951_v27  ;;  %916 = vmatmul.mubr.msk.bf16.gmra.mxu0 %vm534_vm3, %v952_v28 }
  0x2a   :  { %899 = vmatprep.mubr.msk.bf16.mxu1 %vm118_vm2, %v953_v29  ;;  %919 = vmatprep.mubr.msk.bf16.mxu0 %vm534_vm3, %v954_v30 }
  0x31   :  { %900 = vmatmul.mubr.msk.bf16.gmra.mxu1 %vm118_vm2, %v955_v31  ;;  %920 = vmatmul.mubr.msk.bf16.gmra.mxu0 %vm534_vm3, %v956_v32 }
  0xc9   :  { %v871_v33 = vpop.f32.mrf.mxu0  ;;  %v1146_v34 = vpop.f32.mrf.mxu1 }
  0xcb   :  { %v184_v35 = vpop.f32.mrf.mxu0  ;;  %v1148_v36 = vpop.f32.mrf.mxu1 }
  0xcd   :  { %v872_v37 = vpop.f32.mrf.mxu0  ;;  %v1150_v38 = vpop.f32.mrf.mxu1 }
  0xcf   :  { %v187_v39 = vpop.f32.mrf.mxu0  ;;  %v1152_v40 = vpop.f32.mrf.mxu1 }
  0xd1   :  { %v875_v41 = vpop.f32.mrf.mxu0  ;;  %v1154_v42 = vpop.f32.mrf.mxu1 }
  0xd3   :  { %v200_v43 = vpop.f32.mrf.mxu0  ;;  %v1156_v44 = vpop.f32.mrf.mxu1 }
  0xd5   :  { %v876_v45 = vpop.f32.mrf.mxu0  ;;  %v1158_v46 = vpop.f32.mrf.mxu1 }
  0xd7   :  { %v1160_v47 = vpop.f32.mrf.mxu0  ;;  %v1162_v48 = vpop.f32.mrf.mxu1 }
  0xd9   :  { %v889_v50 = vpop.f32.mrf.mxu1  ;;  %v909_v52 = vpop.f32.mrf.mxu0 }
  0xda   :  { %v362_v54 = vadd.f32 %v889_v50, %v871_v33  ;;  %v665_v55 = vmul.f32 %v909_v52, %v1167_v49 }
  0xdb   :  { %v353_v57 = vpop.f32.mrf.mxu1  ;;  %v593_v58 = vpop.f32.mrf.mxu0 }
  0xdc   :  { %v425_v59 = vmul.f32 %v1172_v51, %v362_v54  ;;  %v688_v60 = vadd.f32 %v1177_v53, %v665_v55  ;;  %v354_v61 = vadd.f32 %v353_v57, %v184_v35  ;;  %v663_v62 = vmul.f32 %v1167_v49, %v593_v58 }
  0xdd   :  { %v890_v63 = vpop.f32.mrf.mxu1  ;;  %v910_v0 = vpop.f32.mrf.mxu0 }
  0xde   :  { %v448_v1 = vadd.f32 %v1183_v56, %v425_v59  ;;  %v423_v2 = vmul.f32 %v1172_v51, %v354_v61  ;;  %v365_v3 = vadd.f32 %v890_v63, %v872_v37  ;;  %v686_v4 = vadd.f32 %v1177_v53, %v663_v62 }
  0xdf   :  { %v666_v5 = vmul.f32 %v910_v0, %v1167_v49  ;;  %v356_v6 = vpop.f32.mrf.mxu1  ;;  %v596_v7 = vpop.f32.mrf.mxu0 }
  0xe0   :  { %v704_v8 = vadd.f32 %v688_v60, %v448_v1  ;;  %v446_v9 = vadd.f32 %v1183_v56, %v423_v2  ;;  %v426_v10 = vmul.f32 %v1172_v51, %v365_v3  ;;  %v357_v11 = vadd.f32 %v356_v6, %v187_v39 }
  0xe1   :  { %v689_v12 = vadd.f32 %v1177_v53, %v666_v5  ;;  %v664_v13 = vmul.f32 %v1167_v49, %v596_v7  ;;  %v893_v14 = vpop.f32.mrf.mxu1  ;;  %v913_v15 = vpop.f32.mrf.mxu0 }
  0xe2   :  { %v720_v16 = vmax.f32 %v704_v8, 0.0  ;;  %v702_v17 = vadd.f32 %v686_v4, %v446_v9  ;;  %v449_v18 = vadd.f32 %v1183_v56, %v426_v10  ;;  %v424_v19 = vmul.f32 %v1172_v51, %v357_v11 }
  0xe3   :  { %v687_v20 = vadd.f32 %v1177_v53, %v664_v13  ;;  %v378_v21 = vadd.f32 %v893_v14, %v875_v41  ;;  %v669_v22 = vmul.f32 %v913_v15, %v1167_v49  ;;  %v369_v23 = vpop.f32.mrf.mxu1  ;;  %v609_v24 = vpop.f32.mrf.mxu0 }
  0xe4   :  { %v736_v25 = vmin.f32 %v720_v16, 20.0  ;;  %v718_v26 = vmax.f32 %v702_v17, 0.0  ;;  %v705_v27 = vadd.f32 %v689_v12, %v449_v18  ;;  %v447_v28 = vadd.f32 %v1183_v56, %v424_v19 }
  0xe5   :  { %v429_v29 = vmul.f32 %v1172_v51, %v378_v21  ;;  %v692_v30 = vadd.f32 %v1177_v53, %v669_v22  ;;  %v370_v31 = vadd.f32 %v369_v23, %v200_v43  ;;  %v667_v32 = vmul.f32 %v1167_v49, %v609_v24  ;;  %v894_v33 = vpop.f32.mrf.mxu1  ;;  %v914_v35 = vpop.f32.mrf.mxu0 }
  0xe6   :  { %753 = vst.msk [vmem:[#allocation2 + $0x10] sm:$0xff] %vm750_vm4, %v736_v25  ;;  %v734_v37 = vmin.f32 %v718_v26, 20.0  ;;  %v721_v39 = vmax.f32 %v705_v27, 0.0  ;;  %v703_v41 = vadd.f32 %v687_v20, %v447_v28  ;;  %v381_v50 = vadd.f32 %v894_v33, %v876_v45 }
  0xe7   :  { %v452_v52 = vadd.f32 %v1183_v56, %v429_v29  ;;  %v427_v54 = vmul.f32 %v1172_v51, %v370_v31  ;;  %v690_v55 = vadd.f32 %v1177_v53, %v667_v32  ;;  %v670_v57 = vmul.f32 %v914_v35, %v1167_v49  ;;  %v372_v58 = vpop.f32.mrf.mxu1  ;;  %v612_v43 = vpop.f32.mrf.mxu0 }
  0xe8   :  { %751 = vst.msk [vmem:[#allocation2] sm:$0xff] %vm750_vm4, %v734_v37  ;;  %v737_v59 = vmin.f32 %v721_v39, 20.0  ;;  %v719_v60 = vmax.f32 %v703_v41, 0.0  ;;  %v430_v61 = vmul.f32 %v1172_v51, %v381_v50  ;;  %v373_v62 = vadd.f32 %v372_v58, %v1160_v47 }
  0xe9   :  { %v708_v63 = vadd.f32 %v692_v30, %v452_v52  ;;  %v450_v45 = vadd.f32 %v1183_v56, %v427_v54  ;;  %v693_v0 = vadd.f32 %v1177_v53, %v670_v57  ;;  %v668_v1 = vmul.f32 %v1167_v49, %v612_v43  ;;  %v897_v2 = vpop.f32.mrf.mxu1  ;;  %v917_v3 = vpop.f32.mrf.mxu0 }
  0xea   :  { %754 = vst.msk [vmem:[#allocation2 + $0x18] sm:$0xff] %vm750_vm4, %v737_v59  ;;  %v735_v4 = vmin.f32 %v719_v60, 20.0  ;;  %v453_v5 = vadd.f32 %v1183_v56, %v430_v61  ;;  %v428_v6 = vmul.f32 %v1172_v51, %v373_v62  ;;  %v394_v7 = vadd.f32 %v897_v2, %v1146_v34 }
  0xeb   :  { %v724_v8 = vmax.f32 %v708_v63, 0.0  ;;  %v706_v47 = vadd.f32 %v690_v55, %v450_v45  ;;  %v691_v9 = vadd.f32 %v1177_v53, %v668_v1  ;;  %v673_v10 = vmul.f32 %v917_v3, %v1167_v49  ;;  %v385_v11 = vpop.f32.mrf.mxu1  ;;  %v625_v12 = vpop.f32.mrf.mxu0 }
  0xec   :  { %752 = vst.msk [vmem:[#allocation2 + $0x8] sm:$0xff] %vm750_vm4, %v735_v4  ;;  %v709_v13 = vadd.f32 %v693_v0, %v453_v5  ;;  %v451_v14 = vadd.f32 %v1183_v56, %v428_v6  ;;  %v433_v15 = vmul.f32 %v1172_v51, %v394_v7  ;;  %v386_v16 = vadd.f32 %v385_v11, %v1148_v36 }
  0xed   :  { %v740_v17 = vmin.f32 %v724_v8, 20.0  ;;  %v722_v18 = vmax.f32 %v706_v47, 0.0  ;;  %v696_v34 = vadd.f32 %v1177_v53, %v673_v10  ;;  %v671_v19 = vmul.f32 %v1167_v49, %v625_v12  ;;  %v898_v20 = vpop.f32.mrf.mxu1  ;;  %v918_v21 = vpop.f32.mrf.mxu0 }
  0xee   :  { %v725_v22 = vmax.f32 %v709_v13, 0.0  ;;  %v707_v23 = vadd.f32 %v691_v9, %v451_v14  ;;  %v456_v24 = vadd.f32 %v1183_v56, %v433_v15  ;;  %v431_v25 = vmul.f32 %v1172_v51, %v386_v16 }
  0xef   :  { %757 = vst.msk [vmem:[#allocation2 + $0x30] sm:$0xff] %vm750_vm4, %v740_v17  ;;  %v738_v26 = vmin.f32 %v722_v18, 20.0  ;;  %v694_v27 = vadd.f32 %v1177_v53, %v671_v19  ;;  %v397_v36 = vadd.f32 %v898_v20, %v1150_v38  ;;  %v674_v28 = vmul.f32 %v918_v21, %v1167_v49  ;;  %v388_v29 = vpop.f32.mrf.mxu1  ;;  %v628_v30 = vpop.f32.mrf.mxu0 }
  0xf0   :  { %v741_v31 = vmin.f32 %v725_v22, 20.0  ;;  %v723_v32 = vmax.f32 %v707_v23, 0.0  ;;  %v712_v33 = vadd.f32 %v696_v34, %v456_v24  ;;  %v454_v35 = vadd.f32 %v1183_v56, %v431_v25 }
  0xf1   :  { %755 = vst.msk [vmem:[#allocation2 + $0x20] sm:$0xff] %vm750_vm4, %v738_v26  ;;  %v434_v37 = vmul.f32 %v1172_v51, %v397_v36  ;;  %v697_v39 = vadd.f32 %v1177_v53, %v674_v28  ;;  %v389_v41 = vadd.f32 %v388_v29, %v1152_v40  ;;  %v672_v50 = vmul.f32 %v1167_v49, %v628_v30  ;;  %v901_v38 = vpop.f32.mrf.mxu1  ;;  %v921_v52 = vpop.f32.mrf.mxu0 }
  0xf2   :  { %758 = vst.msk [vmem:[#allocation2 + $0x38] sm:$0xff] %vm750_vm4, %v741_v31  ;;  %v739_v54 = vmin.f32 %v723_v32, 20.0  ;;  %v728_v55 = vmax.f32 %v712_v33, 0.0  ;;  %v710_v57 = vadd.f32 %v694_v27, %v454_v35  ;;  %v410_v58 = vadd.f32 %v901_v38, %v1154_v42 }
  0xf3   :  { %v457_v43 = vadd.f32 %v1183_v56, %v434_v37  ;;  %v432_v59 = vmul.f32 %v1172_v51, %v389_v41  ;;  %v695_v60 = vadd.f32 %v1177_v53, %v672_v50  ;;  %v677_v61 = vmul.f32 %v921_v52, %v1167_v49  ;;  %v401_v40 = vpop.f32.mrf.mxu1  ;;  %v641_v62 = vpop.f32.mrf.mxu0 }
  0xf4   :  { %756 = vst.msk [vmem:[#allocation2 + $0x28] sm:$0xff] %vm750_vm4, %v739_v54  ;;  %v744_v63 = vmin.f32 %v728_v55, 20.0  ;;  %v726_v45 = vmax.f32 %v710_v57, 0.0  ;;  %v437_v0 = vmul.f32 %v1172_v51, %v410_v58  ;;  %v402_v1 = vadd.f32 %v401_v40, %v1156_v44 }
  0xf5   :  { %v713_v2 = vadd.f32 %v697_v39, %v457_v43  ;;  %v455_v42 = vadd.f32 %v1183_v56, %v432_v59  ;;  %v700_v3 = vadd.f32 %v1177_v53, %v677_v61  ;;  %v675_v4 = vmul.f32 %v1167_v49, %v641_v62  ;;  %v902_v5 = vpop.f32.mrf.mxu1  ;;  %v922_v6 = vpop.f32.mrf.mxu0 }
  0xf6   :  { %761 = vst.msk [vmem:[#allocation2 + $0x50] sm:$0xff] %vm750_vm4, %v744_v63  ;;  %v742_v7 = vmin.f32 %v726_v45, 20.0  ;;  %v460_v8 = vadd.f32 %v1183_v56, %v437_v0  ;;  %v435_v47 = vmul.f32 %v1172_v51, %v402_v1  ;;  %v413_v9 = vadd.f32 %v902_v5, %v1158_v46 }
  0xf7   :  { %v729_v10 = vmax.f32 %v713_v2, 0.0  ;;  %v711_v44 = vadd.f32 %v695_v60, %v455_v42  ;;  %v698_v11 = vadd.f32 %v1177_v53, %v675_v4  ;;  %v678_v12 = vmul.f32 %v922_v6, %v1167_v49  ;;  %v404_v13 = vpop.f32.mrf.mxu1  ;;  %v644_v14 = vpop.f32.mrf.mxu0 }
  0xf8   :  { %759 = vst.msk [vmem:[#allocation2 + $0x40] sm:$0xff] %vm750_vm4, %v742_v7  ;;  %v716_v15 = vadd.f32 %v700_v3, %v460_v8  ;;  %v458_v16 = vadd.f32 %v1183_v56, %v435_v47  ;;  %v438_v17 = vmul.f32 %v1172_v51, %v413_v9  ;;  %v405_v18 = vadd.f32 %v404_v13, %v1162_v48 }
  0xf9   :  { %v745_v34 = vmin.f32 %v729_v10, 20.0  ;;  %v727_v19 = vmax.f32 %v711_v44, 0.0  ;;  %v701_v46 = vadd.f32 %v1177_v53, %v678_v12  ;;  %v676_v20 = vmul.f32 %v1167_v49, %v644_v14 }
  0xfa   :  { %v732_v21 = vmax.f32 %v716_v15, 0.0  ;;  %v714_v22 = vadd.f32 %v698_v11, %v458_v16  ;;  %v461_v23 = vadd.f32 %v1183_v56, %v438_v17  ;;  %v436_v24 = vmul.f32 %v1172_v51, %v405_v18 }
  0xfb   :  { %762 = vst.msk [vmem:[#allocation2 + $0x58] sm:$0xff] %vm750_vm4, %v745_v34  ;;  %v743_v25 = vmin.f32 %v727_v19, 20.0  ;;  %v699_v26 = vadd.f32 %v1177_v53, %v676_v20 }
  0xfc   :  { %v748_v27 = vmin.f32 %v732_v21, 20.0  ;;  %v730_v36 = vmax.f32 %v714_v22, 0.0  ;;  %v717_v48 = vadd.f32 %v701_v46, %v461_v23  ;;  %v459_v28 = vadd.f32 %v1183_v56, %v436_v24 }
  0xfd   :  { %760 = vst.msk [vmem:[#allocation2 + $0x48] sm:$0xff] %vm750_vm4, %v743_v25 }
  0xfe   :  { %765 = vst.msk [vmem:[#allocation2 + $0x70] sm:$0xff] %vm750_vm4, %v748_v27  ;;  %v746_v49 = vmin.f32 %v730_v36, 20.0  ;;  %v733_v29 = vmax.f32 %v717_v48, 0.0  ;;  %v715_v30 = vadd.f32 %v699_v26, %v459_v28 }
 0x100   :  { %763 = vst.msk [vmem:[#allocation2 + $0x60] sm:$0xff] %vm750_vm4, %v746_v49  ;;  %v749_v51 = vmin.f32 %v733_v29, 20.0  ;;  %v731_v31 = vmax.f32 %v715_v30, 0.0 }
 0x102   :  { %766 = vst.msk [vmem:[#allocation2 + $0x78] sm:$0xff] %vm750_vm4, %v749_v51  ;;  %v747_v53 = vmin.f32 %v731_v31, 20.0 }
 0x104   :  { %764 = vst.msk [vmem:[#allocation2 + $0x68] sm:$0xff] %vm750_vm4, %v747_v53 }
 0x105   :  { %968 = shalt.err (!%p965_p4)
}
 0x106   :  { %s981_s9 = smov 128   ;;  %s982_s26 = smov 8  }
 0x107   :  { %778 = dma.vmem_to_hbm [thread:$0]  %s773_s5, 2048, %s1286_s10, [#allocation3], %s981_s9, %s981_s9, %s982_s26  }
 0x108   :  { %977 = dma.done.wait [#allocation3], 2048  }
 0x109   :  { %978 = vsyncadd [#allocation3], 4294965248 }
 0x10a   :  { %782 = vsyncpa [#allocation3], 1 }

// kernel: _lambda_.5
= control target key start
LH: loop header
LB: loop body
LE: loop exit
PB: predicated region body
PF: predicated region fallthrough
CT: control target
= control target key end

     0   :  { %vm183_vm0 = vcmask 1041408   ;;  %vm184_vm1 = vcmask 1042432   ;;  %v1882_v1 = vmov 65535   ;;  %vm158_vm2 = vcmask 957440   ;;  %s1883_s25 = smov 115   ;;  %s2575_s1 = inlined_call_operand.vmem [shape: bf16[117,13], index: 1, kind: input, shape index: {}]   ;;  %s2576_s0 = inlined_call_operand.vmem [shape: bf16[128,117], index: 0, kind: input, shape index: {}]   ;;  %s2577_s4 = inlined_call_operand.vmem [shape: bf16[128,26], index: 4, kind: input, shape index: {}]   ;;  %s2578_s6 = inlined_call_operand.vmem [shape: bf16[13,3], index: 6, kind: input, shape index: {}]   ;;  %s2579_s5 = inlined_call_operand.vmem [shape: bf16[13,3], index: 5, kind: input, shape index: {}]   ;;  %s2580_s9 = inlined_call_operand.vmem [shape: bf16[3,13], index: 9, kind: input, shape index: {}]   ;;  %s2581_s2 = inlined_call_operand.vmem [shape: f32[1,13], index: 2, kind: input, shape index: {}]   ;;  %s2582_s3 = inlined_call_operand.vmem [shape: f32[1,13], index: 3, kind: input, shape index: {}]   ;;  %s2583_s7 = inlined_call_operand.vmem [shape: f32[1,3], index: 7, kind: input, shape index: {}]   ;;  %s2584_s8 = inlined_call_operand.vmem [shape: f32[1,3], index: 8, kind: input, shape index: {}]   ;;  %s2585_s10 = inlined_call_operand.vmem [shape: f32[1,13], index: 10, kind: input, shape index: {}]   ;;  %s2586_s11 = inlined_call_operand.vmem [shape: f32[1,13], index: 11, kind: input, shape index: {}]   ;;  %s2587_s12 = inlined_call_operand.vmem [shape: bf16[128,26], index: 12, kind: output, shape index: {}]  }
   0x1   :  { %v1744_v0 = vld [vmem:[%s2575_s1 + $0x38] ss:$0 sps:$4 sm:$0x77]   ;;  %v185_v2 = vsel %vm183_vm0, 4294967295, %v1882_v1  ;;  %v1745_v5 = vld [vmem:[%s2575_s1 + $0x30] sm:$0xff]   ;;  %v1746_v6 = vld [vmem:[%s2575_s1 + $0x28] sm:$0xff]  }
   0x2   :  { %v186_v3 = vsel %vm184_vm1, %v185_v2, 0  ;;  %v1752_v7 = vld [vmem:[%s2576_s0] sm:$0xff]   ;;  %vm495_vm3 = vcmask 1045504   ;;  %v1748_v9 = vld [vmem:[%s2575_s1 + $0x18] sm:$0xff]   ;;  %vm496_vm4 = vcmask 1046528   ;;  %v367_v12 = vld [vmem:[%s2577_s4 + $0x8] sm:$0xff]  }
   0x3   :  { %v188_v4 = vand.u32 %v1744_v0, %v186_v3  ;;  %v1747_v8 = vld [vmem:[%s2575_s1 + $0x20] sm:$0xff]   ;;  %1629 = vmatprep.mubr.msk.bf16.mxu0 %vm158_vm2, %v1752_v7  ;;  %v497_v11 = vsel %vm495_vm3, 4294967295, %v1882_v1  ;;  %v369_v13 = vld [vmem:[%s2577_s4 + $0x10] sm:$0xff]   ;;  %v371_v14 = vld [vmem:[%s2577_s4 + $0x18] sm:$0xff]   ;;  %vm920_vm5 = vcmask 1040384   ;;  %vm470_vm6 = vcmask 105472  }
   0x4   :  { %v365_v10 = vld [vmem:[%s2577_s4] sm:$0xff]   ;;  %v1749_v15 = vld [vmem:[%s2575_s1 + $0x10] sm:$0xff]   ;;  %v498_v17 = vsel %vm496_vm4, %v497_v11, 0  ;;  %453 = vrot.lane.b32.xlu1 %v369_v13, %s1883_s25  ;;  %v375_v19 = vld [vmem:[%s2577_s4 + $0x28] sm:$0xff]   ;;  %v921_v24 = vsel %vm920_vm5, 4294967295, %v1882_v1  ;;  %vm895_vm7 = vcmask 23552  }
   0x5   :  { %1613 = vmatprep.subr.bf16.mxu0 %v188_v4  ;;  %449 = vrot.lane.b32.xlu0 %v365_v10, %s1883_s25  ;;  %v373_v16 = vld [vmem:[%s2577_s4 + $0x20] sm:$0xff]   ;;  %v1750_v21 = vld [vmem:[%s2575_s1 + $0x8] sm:$0xff]   ;;  %v377_v25 = vld [vmem:[%s2577_s4 + $0x30] sm:$0xff]   ;;  %v922_v29 = vsel %vm183_vm0, %v921_v24, 0  ;;  %vm1437_vm8 = vcmask 207872  }
   0x6   :  { %1614 = vmatpush3.bf16.msra.mxu0 %v188_v4  ;;  %v1768_v18 = vld [vmem:[%s2578_s6] sm:$0x7f]   ;;  %v379_v26 = vld [vmem:[%s2577_s4 + $0x38] sm:$0xff]   ;;  %v1753_v31 = vld [vmem:[%s2576_s0 + $0x8] sm:$0xff]  }
   0x7   :  { %1615 = vmatprep.subr.bf16.mxu0 %v1745_v5  ;;  %v1769_v20 = vld [vmem:[%s2579_s5] sm:$0x7f]   ;;  %v500_v22 = vand.u32 %v1768_v18, %v498_v17  ;;  %v1754_v32 = vld [vmem:[%s2576_s0 + $0x10] sm:$0xff]   ;;  %v1755_v33 = vld [vmem:[%s2576_s0 + $0x18] sm:$0xff]  }
   0x8   :  { %v629_v23 = vand.u32 %v1769_v20, %v498_v17  ;;  %455 = vrot.lane.b32.xlu1 %v371_v14, %s1883_s25  ;;  %v1751_v27 = vld [vmem:[%s2575_s1] sm:$0xff]   ;;  %v1757_v35 = vld [vmem:[%s2576_s0 + $0x28] sm:$0xff]   ;;  %v1758_v36 = vld [vmem:[%s2576_s0 + $0x30] sm:$0xff]  }
   0x9   :  { %451 = vrot.lane.b32.xlu0 %v367_v12, %s1883_s25  ;;  %1645 = vmatprep.subr.bf16.mxu1 %v500_v22  ;;  %v894_v28 = vld [vmem:[%s2580_s9] sm:$0x3]  ;;  %v1759_v37 = vld [vmem:[%s2576_s0 + $0x38] sm:$0xff]  }
   0xa   :  { %1616 = vmatpush3.bf16.msra.mxu0 %v1745_v5  ;;  %1646 = vmatpush3.bf16.msra.mxu1 %v500_v22  ;;  %v2019_v30 = vand.u32 %v922_v29, %v894_v28  ;;  %v1756_v34 = vld [vmem:[%s2576_s0 + $0x20] sm:$0xff]  }
   0xb   :  { %1617 = vmatprep.subr.bf16.mxu0 %v1746_v6  ;;  %1663 = vmatprep.subr.bf16.mxu1 %v629_v23  ;;  %v2065_v46 = vld [vmem:[%s2581_s2] ss:$0 sm:$0xff] }
   0xc   :  { %459 = vrot.lane.b32.xlu1 %v375_v19, %s1883_s25  ;;  %v2071_v50 = vld [vmem:[%s2582_s3] ss:$0 sm:$0xff] }
   0xd   :  { %457 = vrot.lane.b32.xlu0 %v373_v16, %s1883_s25 }
   0xe   :  { %1618 = vmatpush3.bf16.msra.mxu0 %v1746_v6 }
   0xf   :  { %1619 = vmatprep.subr.bf16.mxu0 %v1747_v8 }
  0x10   :  { %463 = vrot.lane.b32.xlu1 %v379_v26, %s1883_s25 }
  0x11   :  { %461 = vrot.lane.b32.xlu0 %v377_v25, %s1883_s25 }
  0x12   :  { %1620 = vmatpush3.bf16.msra.mxu0 %v1747_v8 }
  0x13   :  { %1621 = vmatprep.subr.bf16.mxu0 %v1748_v9 }
  0x16   :  { %1622 = vmatpush3.bf16.msra.mxu0 %v1748_v9 }
  0x17   :  { %1623 = vmatprep.subr.bf16.mxu0 %v1749_v15 }
  0x1a   :  { %1624 = vmatpush3.bf16.msra.mxu0 %v1749_v15 }
  0x1b   :  { %1625 = vmatprep.subr.bf16.mxu0 %v1750_v21 }
  0x1e   :  { %1626 = vmatpush3.bf16.msra.mxu0 %v1750_v21 }
  0x1f   :  { %1627 = vmatprep.subr.bf16.mxu0 %v1751_v27 }
  0x22   :  { %1628 = vmatpush3.bf16.msra.mxu0 %v1751_v27 }
  0x23   :  { %1681 = vmatprep.subr.bf16.mxu0 %v2019_v30 }
  0x25   :  { %1630 = vmatmul.mubr.msk.bf16.vlgmr.msra.gmra.mxu0 %vm158_vm2, %v1753_v31 }
  0x26   :  { %1633 = vmatprep.mubr.msk.bf16.mxu0 %vm158_vm2, %v1754_v32  ;;  %1682 = vmatpush3.bf16.msra.mxu0 %v2019_v30 }
  0x2d   :  { %1634 = vmatmul.mubr.msk.bf16.gmra.mxu0 %vm158_vm2, %v1755_v33 }
  0x2e   :  { %1637 = vmatprep.mubr.msk.bf16.mxu0 %vm158_vm2, %v1756_v34 }
  0x35   :  { %1638 = vmatmul.mubr.msk.bf16.gmra.mxu0 %vm158_vm2, %v1757_v35 }
  0x36   :  { %1641 = vmatprep.mubr.msk.bf16.mxu0 %vm158_vm2, %v1758_v36 }
  0x3d   :  { %1642 = vmatmul.mubr.msk.bf16.gmra.mxu0 %vm158_vm2, %v1759_v37 }
  0x76   :  { %v454_v40 = vpop.permute.xlu1 %453 }
  0x77   :  { %v450_v38 = vpop.permute.xlu0 %449 }
  0x78   :  { %1647 = vmatprep.mubr.msk.bf16.mxu1 %vm470_vm6, %v450_v38 }
  0x7a   :  { %v456_v41 = vpop.permute.xlu1 %455 }
  0x7b   :  { %v452_v39 = vpop.permute.xlu0 %451 }
  0x7c   :  { %1648 = vmatmul.mubr.msk.bf16.vlgmr.msra.gmra.mxu1 %vm470_vm6, %v452_v39 }
  0x7d   :  { %1664 = vmatpush3.bf16.msra.mxu1 %v629_v23  ;;  %1651 = vmatprep.mubr.msk.bf16.mxu1 %vm470_vm6, %v454_v40 }
  0x7e   :  { %1699 = vmatprep.subr.bf16.mxu1 %v2019_v30  ;;  %v460_v43 = vpop.permute.xlu1 %459 }
  0x7f   :  { %v458_v42 = vpop.permute.xlu0 %457 }
  0x82   :  { %v464_v45 = vpop.permute.xlu1 %463 }
  0x83   :  { %v462_v44 = vpop.permute.xlu0 %461 }
  0x84   :  { %1652 = vmatmul.mubr.msk.bf16.gmra.mxu1 %vm470_vm6, %v456_v41 }
  0x85   :  { %1655 = vmatprep.mubr.msk.bf16.mxu1 %vm470_vm6, %v458_v42 }
  0x8c   :  { %1656 = vmatmul.mubr.msk.bf16.gmra.mxu1 %vm470_vm6, %v460_v43 }
  0x8d   :  { %1659 = vmatprep.mubr.msk.bf16.mxu1 %vm470_vm6, %v462_v44 }
  0x94   :  { %1660 = vmatmul.mubr.msk.bf16.gmra.mxu1 %vm470_vm6, %v464_v45 }
  0xe5   :  { %v1631_v47 = vpop.f32.mrf.mxu0 }
  0xe6   :  { %v296_v48 = vmul.f32 %v1631_v47, %v2065_v46 }
  0xe7   :  { %v224_v49 = vpop.f32.mrf.mxu0 }
  0xe8   :  { %v294_v51 = vmul.f32 %v2065_v46, %v224_v49  ;;  %v319_v55 = vadd.f32 %v2071_v50, %v296_v48 }
  0xe9   :  { %v1632_v52 = vpop.f32.mrf.mxu0 }
  0xea   :  { %v317_v53 = vadd.f32 %v2071_v50, %v294_v51  ;;  %v297_v54 = vmul.f32 %v1632_v52, %v2065_v46  ;;  %v335_v63 = vmax.f32 %v319_v55, 0.0 }
  0xeb   :  { %v227_v56 = vpop.f32.mrf.mxu0 }
  0xec   :  { %v320_v57 = vadd.f32 %v2071_v50, %v297_v54  ;;  %v295_v58 = vmul.f32 %v2065_v46, %v227_v56  ;;  %v333_v60 = vmax.f32 %v317_v53, 0.0  ;;  %v2088_v8 = vmin.f32 %v335_v63, 20.0 }
  0xed   :  { %v1635_v59 = vpop.f32.mrf.mxu0 }
  0xee   :  { %v336_v61 = vmax.f32 %v320_v57, 0.0  ;;  %v318_v62 = vadd.f32 %v2071_v50, %v295_v58  ;;  %v300_v2 = vmul.f32 %v1635_v59, %v2065_v46  ;;  %v2084_v6 = vmin.f32 %v333_v60, 20.0 }
  0xef   :  { %v240_v0 = vpop.f32.mrf.mxu0 }
  0xf0   :  { %v334_v1 = vmax.f32 %v318_v62, 0.0  ;;  %v298_v3 = vmul.f32 %v2065_v46, %v240_v0  ;;  %v2082_v4 = vmin.f32 %v336_v61, 20.0  ;;  %v323_v12 = vadd.f32 %v2071_v50, %v300_v2 }
  0xf1   :  { %v1636_v5 = vpop.f32.mrf.mxu0 }
  0xf2   :  { %v2086_v7 = vmin.f32 %v334_v1, 20.0  ;;  %v321_v9 = vadd.f32 %v2071_v50, %v298_v3  ;;  %v301_v10 = vmul.f32 %v1636_v5, %v2065_v46  ;;  %v398_v15 = vpack.c.bf16 %v2082_v4, %v2088_v8 }
  0xf3   :  { %v243_v11 = vpop.f32.mrf.mxu0  ;;  %v339_v22 = vmax.f32 %v323_v12, 0.0 }
  0xf4   :  { %v299_v13 = vmul.f32 %v2065_v46, %v243_v11  ;;  %v397_v14 = vpack.c.bf16 %v2086_v7, %v2084_v6  ;;  %v324_v16 = vadd.f32 %v2071_v50, %v301_v10  ;;  %v337_v19 = vmax.f32 %v321_v9, 0.0 }
  0xf5   :  { %v1639_v17 = vpop.f32.mrf.mxu0  ;;  %v2113_v34 = vmin.f32 %v339_v22, 20.0 }
  0xf6   :  { %v322_v18 = vadd.f32 %v2071_v50, %v299_v13  ;;  %1665 = vmatprep.mubr.msk.bf16.mxu1 %vm470_vm6, %v397_v14  ;;  %v340_v20 = vmax.f32 %v324_v16, 0.0  ;;  %v304_v24 = vmul.f32 %v1639_v17, %v2065_v46  ;;  %v2110_v31 = vmin.f32 %v337_v19, 20.0 }
  0xf7   :  { %v256_v21 = vpop.f32.mrf.mxu0  ;;  %1666 = vmatmul.mubr.msk.bf16.vlgmr.msra.gmra.mxu1 %vm470_vm6, %v398_v15 }
  0xf8   :  { %v338_v23 = vmax.f32 %v322_v18, 0.0  ;;  %v302_v25 = vmul.f32 %v2065_v46, %v256_v21  ;;  %1700 = vmatpush3.bf16.msra.mxu1 %v2019_v30  ;;  %v2105_v27 = vmin.f32 %v340_v20, 20.0  ;;  %v327_v35 = vadd.f32 %v2071_v50, %v304_v24 }
  0xf9   :  { %v1640_v26 = vpop.f32.mrf.mxu0 }
  0xfa   :  { %v2107_v28 = vmin.f32 %v338_v23, 20.0  ;;  %v305_v29 = vmul.f32 %v1640_v26, %v2065_v46  ;;  %v325_v32 = vadd.f32 %v2071_v50, %v302_v25  ;;  %v400_v41 = vpack.c.bf16 %v2105_v27, %v2113_v34 }
  0xfb   :  { %v259_v33 = vpop.f32.mrf.mxu0  ;;  %v343_v44 = vmax.f32 %v327_v35, 0.0 }
  0xfc   :  { %v328_v36 = vadd.f32 %v2071_v50, %v305_v29  ;;  %v303_v30 = vmul.f32 %v2065_v46, %v259_v33  ;;  %v399_v38 = vpack.c.bf16 %v2107_v28, %v2110_v31  ;;  %v341_v42 = vmax.f32 %v325_v32, 0.0  ;;  %v2176_v33 = vld [vmem:[%s2583_s7] ss:$0 sm:$0xff] }
  0xfd   :  { %v1643_v37 = vpop.f32.mrf.mxu0  ;;  %v2135_v57 = vmin.f32 %v343_v44, 20.0 }
  0xfe   :  { %v344_v39 = vmax.f32 %v328_v36, 0.0  ;;  %v326_v40 = vadd.f32 %v2071_v50, %v303_v30  ;;  %1669 = vmatprep.mubr.msk.bf16.mxu1 %vm470_vm6, %v399_v38  ;;  %v308_v47 = vmul.f32 %v1643_v37, %v2065_v46  ;;  %v2133_v55 = vmin.f32 %v341_v42, 20.0  ;;  %v2181_v36 = vld [vmem:[%s2584_s8] ss:$0 sm:$0xff] }
  0xff   :  { %v272_v43 = vpop.f32.mrf.mxu0  ;;  %1670 = vmatmul.mubr.msk.bf16.gmra.mxu1 %vm470_vm6, %v400_v41 }
 0x100   :  { %v342_v45 = vmax.f32 %v326_v40, 0.0  ;;  %v306_v48 = vmul.f32 %v2065_v46, %v272_v43  ;;  %v2127_v51 = vmin.f32 %v344_v39, 20.0  ;;  %v331_v58 = vadd.f32 %v2071_v50, %v308_v47 }
 0x101   :  { %v1644_v49 = vpop.f32.mrf.mxu0 }
 0x102   :  { %v2129_v52 = vmin.f32 %v342_v45, 20.0  ;;  %v329_v53 = vadd.f32 %v2071_v50, %v306_v48  ;;  %v309_v54 = vmul.f32 %v1644_v49, %v2065_v46  ;;  %v402_v1 = vpack.c.bf16 %v2127_v51, %v2135_v57 }
 0x103   :  { %v275_v56 = vpop.f32.mrf.mxu0  ;;  %v347_v2 = vmax.f32 %v331_v58, 0.0 }
 0x104   :  { %v332_v59 = vadd.f32 %v2071_v50, %v309_v54  ;;  %v307_v60 = vmul.f32 %v2065_v46, %v275_v56  ;;  %v401_v61 = vpack.c.bf16 %v2129_v52, %v2133_v55  ;;  %v345_v62 = vmax.f32 %v329_v53, 0.0 }
 0x105   :  { %v2153_v10 = vmin.f32 %v347_v2, 20.0 }
 0x106   :  { %v348_v63 = vmax.f32 %v332_v59, 0.0  ;;  %v330_v0 = vadd.f32 %v2071_v50, %v307_v60  ;;  %1673 = vmatprep.mubr.msk.bf16.mxu1 %vm470_vm6, %v401_v61  ;;  %v2147_v5 = vmin.f32 %v345_v62, 20.0 }
 0x107   :  { %1674 = vmatmul.mubr.msk.bf16.gmra.mxu1 %vm470_vm6, %v402_v1 }
 0x108   :  { %v346_v3 = vmax.f32 %v330_v0, 0.0  ;;  %v2149_v9 = vmin.f32 %v348_v63, 20.0 }
 0x10a   :  { %v2151_v46 = vmin.f32 %v346_v3, 20.0  ;;  %v404_v11 = vpack.c.bf16 %v2149_v9, %v2153_v10 }
 0x10c   :  { %v403_v50 = vpack.c.bf16 %v2151_v46, %v2147_v5 }
 0x10e   :  { %1677 = vmatprep.mubr.msk.bf16.mxu1 %vm470_vm6, %v403_v50 }
 0x10f   :  { %1678 = vmatmul.mubr.msk.bf16.gmra.mxu1 %vm470_vm6, %v404_v11 }
 0x13c   :  { %v1649_v12 = vpop.f32.mrf.mxu1 }
 0x13e   :  { %v536_v13 = vpop.f32.mrf.mxu1 }
 0x140   :  { %v1650_v14 = vpop.f32.mrf.mxu1 }
 0x142   :  { %v539_v15 = vpop.f32.mrf.mxu1 }
 0x144   :  { %v1653_v16 = vpop.f32.mrf.mxu1 }
 0x146   :  { %v552_v17 = vpop.f32.mrf.mxu1 }
 0x148   :  { %v1654_v18 = vpop.f32.mrf.mxu1 }
 0x14a   :  { %v555_v19 = vpop.f32.mrf.mxu1 }
 0x14c   :  { %v1657_v20 = vpop.f32.mrf.mxu1 }
 0x14e   :  { %v568_v21 = vpop.f32.mrf.mxu1 }
 0x150   :  { %v2161_v22 = vpop.f32.mrf.mxu1 }
 0x152   :  { %v2163_v23 = vpop.f32.mrf.mxu1 }
 0x154   :  { %v2165_v24 = vpop.f32.mrf.mxu1 }
 0x156   :  { %v2167_v25 = vpop.f32.mrf.mxu1 }
 0x158   :  { %v2169_v26 = vpop.f32.mrf.mxu1 }
 0x15a   :  { %v2171_v29 = vpop.f32.mrf.mxu1 }
 0x1b7   :  { %v1667_v32 = vpop.f32.mrf.mxu1 }
 0x1b8   :  { %v674_v35 = vadd.f32 %v1667_v32, %v1649_v12 }
 0x1b9   :  { %v665_v30 = vpop.f32.mrf.mxu1 }
 0x1ba   :  { %v737_v37 = vmul.f32 %v2176_v33, %v674_v35  ;;  %v666_v38 = vadd.f32 %v665_v30, %v536_v13 }
 0x1bb   :  { %v1668_v39 = vpop.f32.mrf.mxu1 }
 0x1bc   :  { %v2185_v40 = vadd.f32 %v2181_v36, %v737_v37  ;;  %v735_v41 = vmul.f32 %v2176_v33, %v666_v38  ;;  %v677_v42 = vadd.f32 %v1668_v39, %v1650_v14 }
 0x1bd   :  { %v668_v43 = vpop.f32.mrf.mxu1 }
 0x1be   :  { %v1514_v44 = vmul.f32 -1.442695, %v2185_v40  ;;  %v2190_v45 = vadd.f32 %v2181_v36, %v735_v41  ;;  %v738_v47 = vmul.f32 %v2176_v33, %v677_v42  ;;  %v669_v48 = vadd.f32 %v668_v43, %v539_v15 }
 0x1bf   :  { %v1671_v56 = vpop.f32.mrf.mxu1 }
 0x1c0   :  { %1778 = vpow2.f32 %v1514_v44  ;;  %v1512_v49 = vmul.f32 -1.442695, %v2190_v45  ;;  %v2195_v53 = vadd.f32 %v2181_v36, %v738_v47  ;;  %v736_v54 = vmul.f32 %v2176_v33, %v669_v48 }
 0x1c1   :  { %v690_v58 = vadd.f32 %v1671_v56, %v1653_v16  ;;  %v681_v61 = vpop.f32.mrf.mxu1 }
 0x1c2   :  { %1780 = vpow2.f32 %v1512_v49  ;;  %v1515_v59 = vmul.f32 -1.442695, %v2195_v53  ;;  %v2200_v60 = vadd.f32 %v2181_v36, %v736_v54  ;;  %v682_v63 = vadd.f32 %v681_v61, %v552_v17 }
 0x1c3   :  { %v741_v62 = vmul.f32 %v2176_v33, %v690_v58  ;;  %v1672_v1 = vpop.f32.mrf.mxu1 }
 0x1c4   :  { %1782 = vpow2.f32 %v1515_v59  ;;  %v1513_v0 = vmul.f32 -1.442695, %v2200_v60  ;;  %v739_v3 = vmul.f32 %v2176_v33, %v682_v63  ;;  %v693_v50 = vadd.f32 %v1672_v1, %v1654_v18 }
 0x1c5   :  { %v2205_v2 = vadd.f32 %v2181_v36, %v741_v62  ;;  %v684_v11 = vpop.f32.mrf.mxu1 }
 0x1c6   :  { %1784 = vpow2.f32 %v1513_v0  ;;  %v2210_v13 = vadd.f32 %v2181_v36, %v739_v3  ;;  %v742_v14 = vmul.f32 %v2176_v33, %v693_v50  ;;  %v685_v15 = vadd.f32 %v684_v11, %v555_v19 }
 0x1c7   :  { %v1518_v12 = vmul.f32 -1.442695, %v2205_v2  ;;  %v1675_v16 = vpop.f32.mrf.mxu1 }
 0x1c8   :  { %v1516_v17 = vmul.f32 -1.442695, %v2210_v13  ;;  %v2215_v32 = vadd.f32 %v2181_v36, %v742_v14  ;;  %v740_v35 = vmul.f32 %v2176_v33, %v685_v15  ;;  %v706_v18 = vadd.f32 %v1675_v16, %v1657_v20 }
 0x1c9   :  { %1786 = vpow2.f32 %v1518_v12  ;;  %v697_v30 = vpop.f32.mrf.mxu1 }
 0x1ca   :  { %1788 = vpow2.f32 %v1516_v17  ;;  %v1519_v37 = vmul.f32 -1.442695, %v2215_v32  ;;  %v2220_v38 = vadd.f32 %v2181_v36, %v740_v35  ;;  %v698_v39 = vadd.f32 %v697_v30, %v568_v21 }
 0x1cb   :  { %v745_v19 = vmul.f32 %v2176_v33, %v706_v18  ;;  %v1676_v41 = vpop.f32.mrf.mxu1 }
 0x1cc   :  { %1790 = vpow2.f32 %v1519_v37  ;;  %v1517_v43 = vmul.f32 -1.442695, %v2220_v38  ;;  %v743_v44 = vmul.f32 %v2176_v33, %v698_v39  ;;  %v709_v47 = vadd.f32 %v1676_v41, %v2161_v22 }
 0x1cd   :  { %v1779_v42 = vpop.eup %1778  ;;  %v2227_v48 = vadd.f32 %v2181_v36, %v745_v19  ;;  %v700_v49 = vpop.f32.mrf.mxu1 }
 0x1ce   :  { %v824_v20 = vadd.f32 1.0, %v1779_v42  ;;  %1792 = vpow2.f32 %v1517_v43  ;;  %v2230_v21 = vadd.f32 %v2181_v36, %v743_v44  ;;  %v746_v56 = vmul.f32 %v2176_v33, %v709_v47 }
 0x1cf   :  { %v1781_v54 = vpop.eup %1780  ;;  %v701_v58 = vadd.f32 %v700_v49, %v2163_v23  ;;  %v1522_v61 = vmul.f32 -1.442695, %v2227_v48  ;;  %v1679_v62 = vpop.f32.mrf.mxu1 }
 0x1d0   :  { %1794 = vrcp.f32 %v824_v20  ;;  %v822_v59 = vadd.f32 1.0, %v1781_v54  ;;  %v1520_v63 = vmul.f32 -1.442695, %v2230_v21  ;;  %v2237_v0 = vadd.f32 %v2181_v36, %v746_v56 }
 0x1d1   :  { %v1783_v22 = vpop.eup %1782  ;;  %v744_v1 = vmul.f32 %v2176_v33, %v701_v58  ;;  %v722_v3 = vadd.f32 %v1679_v62, %v2165_v24  ;;  %v713_v11 = vpop.f32.mrf.mxu1 }
 0x1d2   :  { %1796 = vrcp.f32 %v822_v59  ;;  %v825_v50 = vadd.f32 1.0, %v1783_v22  ;;  %v1523_v23 = vmul.f32 -1.442695, %v2237_v0  ;;  %v714_v17 = vadd.f32 %v713_v11, %v2167_v25 }
 0x1d3   :  { %v1785_v12 = vpop.eup %1784  ;;  %1798 = vpow2.f32 %v1522_v61  ;;  %v2243_v14 = vadd.f32 %v2181_v36, %v744_v1  ;;  %v749_v15 = vmul.f32 %v2176_v33, %v722_v3  ;;  %v1680_v35 = vpop.f32.mrf.mxu1 }
 0x1d4   :  { %1800 = vrcp.f32 %v825_v50  ;;  %v823_v16 = vadd.f32 1.0, %v1785_v12  ;;  %v725_v30 = vadd.f32 %v1680_v35, %v2169_v26  ;;  %v747_v39 = vmul.f32 %v2176_v33, %v714_v17 }
 0x1d5   :  { %1802 = vpow2.f32 %v1520_v63  ;;  %v1521_v24 = vmul.f32 -1.442695, %v2243_v14  ;;  %v2249_v18 = vadd.f32 %v2181_v36, %v749_v15  ;;  %v716_v19 = vpop.f32.mrf.mxu1 }
 0x1d6   :  { %v1787_v37 = vpop.eup %1786  ;;  %1804 = vrcp.f32 %v823_v16  ;;  %v750_v25 = vmul.f32 %v2176_v33, %v725_v30  ;;  %v2256_v44 = vadd.f32 %v2181_v36, %v747_v39  ;;  %v717_v47 = vadd.f32 %v716_v19, %v2171_v29 }
 0x1d7   :  { %v828_v41 = vadd.f32 1.0, %v1787_v37  ;;  %1806 = vpow2.f32 %v1523_v23  ;;  %v1526_v42 = vmul.f32 -1.442695, %v2249_v18  ;;  %v1789_v43 = vpop.eup %1788 }
 0x1d8   :  { %1808 = vpow2.f32 %v1521_v24  ;;  %v826_v26 = vadd.f32 1.0, %v1789_v43  ;;  %v2260_v20 = vadd.f32 %v2181_v36, %v750_v25  ;;  %v1524_v54 = vmul.f32 -1.442695, %v2256_v44 }
 0x1d9   :  { %1810 = vrcp.f32 %v828_v41  ;;  %v1791_v49 = vpop.eup %1790  ;;  %v748_v56 = vmul.f32 %v2176_v33, %v717_v47 }
 0x1da   :  { %1812 = vpow2.f32 %v1526_v42  ;;  %v829_v58 = vadd.f32 1.0, %v1791_v49  ;;  %v1527_v59 = vmul.f32 -1.442695, %v2260_v20 }
 0x1db   :  { %1814 = vrcp.f32 %v826_v26  ;;  %v1793_v61 = vpop.eup %1792  ;;  %v2266_v62 = vadd.f32 %v2181_v36, %v748_v56 }
 0x1dc   :  { %1816 = vpow2.f32 %v1524_v54  ;;  %v827_v22 = vadd.f32 1.0, %v1793_v61 }
 0x1dd   :  { %v1795_v29 = vpop.eup %1794  ;;  %1818 = vrcp.f32 %v829_v58  ;;  %v1525_v63 = vmul.f32 -1.442695, %v2266_v62 }
 0x1de   :  { %1820 = vpow2.f32 %v1527_v59  ;;  %v872_v24 = vmul.f32 %v1795_v29, %v2185_v40 }
 0x1df   :  { %v1797_v1 = vpop.eup %1796  ;;  %1822 = vrcp.f32 %v827_v22 }
 0x1e0   :  { %v1799_v3 = vpop.eup %1798  ;;  %1824 = vpow2.f32 %v1525_v63  ;;  %v870_v36 = vmul.f32 %v1797_v1, %v2190_v45 }
 0x1e1   :  { %v1801_v33 = vpop.eup %1800  ;;  %v832_v50 = vadd.f32 1.0, %v1799_v3 }
 0x1e2   :  { %v1803_v11 = vpop.eup %1802  ;;  %v873_v23 = vmul.f32 %v1801_v33, %v2195_v53 }
 0x1e3   :  { %v1805_v12 = vpop.eup %1804  ;;  %v830_v15 = vadd.f32 1.0, %v1803_v11  ;;  %1826 = vrcp.f32 %v832_v50 }
 0x1e4   :  { %v1807_v16 = vpop.eup %1806  ;;  %v871_v17 = vmul.f32 %v1805_v12, %v2200_v60  ;;  %v887_v42 = vpack.c.bf16 %v873_v23, %v872_v24 }
 0x1e5   :  { %v1809_v35 = vpop.eup %1808  ;;  %v833_v30 = vadd.f32 1.0, %v1807_v16  ;;  %1828 = vrcp.f32 %v830_v15 }
 0x1e6   :  { %v1811_v37 = vpop.eup %1810  ;;  %v831_v39 = vadd.f32 1.0, %v1809_v35  ;;  %v886_v19 = vpack.c.bf16 %v871_v17, %v870_v36  ;;  %v2296_v35 = vld [vmem:[%s2585_s10] ss:$0 sm:$0xff]  ;;  %s1884_s10 = smov 13  }
 0x1e7   :  { %v1813_v41 = vpop.eup %1812  ;;  %1830 = vrcp.f32 %v833_v30  ;;  %v876_v59 = vmul.f32 %v1811_v37, %v2205_v2 }
 0x1e8   :  { %v1815_v53 = vpop.eup %1814  ;;  %1832 = vrcp.f32 %v831_v39  ;;  %1683 = vmatprep.mubr.msk.bf16.mxu0 %vm895_vm7, %v886_v19  ;;  %v836_v43 = vadd.f32 1.0, %v1813_v41 }
 0x1e9   :  { %v1817_v45 = vpop.eup %1816  ;;  %1684 = vmatmul.mubr.msk.bf16.vlgmr.msra.gmra.mxu0 %vm895_vm7, %v887_v42  ;;  %v874_v56 = vmul.f32 %v1815_v53, %v2210_v13 }
 0x1ea   :  { %v1819_v60 = vpop.eup %1818  ;;  %v834_v25 = vadd.f32 1.0, %v1817_v45 }
 0x1eb   :  { %v1821_v40 = vpop.eup %1820  ;;  %v877_v26 = vmul.f32 %v1819_v60, %v2215_v32 }
 0x1ec   :  { %v1823_v47 = vpop.eup %1822  ;;  %v837_v49 = vadd.f32 1.0, %v1821_v40  ;;  %1834 = vrcp.f32 %v834_v25 }
 0x1ed   :  { %v1825_v54 = vpop.eup %1824  ;;  %v875_v58 = vmul.f32 %v1823_v47, %v2220_v38  ;;  %v889_v22 = vpack.c.bf16 %v877_v26, %v876_v59 }
 0x1ee   :  { %1836 = vrcp.f32 %v837_v49  ;;  %v835_v61 = vadd.f32 1.0, %v1825_v54 }
 0x1ef   :  { %1838 = vrcp.f32 %v836_v43  ;;  %v888_v29 = vpack.c.bf16 %v875_v58, %v874_v56 }
 0x1f0   :  { %1840 = vrcp.f32 %v835_v61  ;;  %v1827_v63 = vpop.eup %1826 }
 0x1f1   :  { %1687 = vmatprep.mubr.msk.bf16.mxu0 %vm895_vm7, %v888_v29  ;;  %v880_v33 = vmul.f32 %v1827_v63, %v2227_v48 }
 0x1f2   :  { %1688 = vmatmul.mubr.msk.bf16.gmra.mxu0 %vm895_vm7, %v889_v22  ;;  %v1829_v32 = vpop.eup %1828 }
 0x1f3   :  { %v878_v38 = vmul.f32 %v1829_v32, %v2230_v21 }
 0x1f4   :  { %v1831_v1 = vpop.eup %1830 }
 0x1f5   :  { %v1833_v3 = vpop.eup %1832  ;;  %v881_v13 = vmul.f32 %v1831_v1, %v2237_v0 }
 0x1f6   :  { %v879_v2 = vmul.f32 %v1833_v3, %v2243_v14 }
 0x1f7   :  { %v891_v11 = vpack.c.bf16 %v881_v13, %v880_v33 }
 0x1f8   :  { %v890_v50 = vpack.c.bf16 %v879_v2, %v878_v38 }
 0x1f9   :  { %v1835_v12 = vpop.eup %1834 }
 0x1fa   :  { %1691 = vmatprep.mubr.msk.bf16.mxu0 %vm895_vm7, %v890_v50  ;;  %v882_v0 = vmul.f32 %v1835_v12, %v2256_v44  ;;  %v2301_v44 = vld [vmem:[%s2586_s11] ss:$0 sm:$0xff] }
 0x1fb   :  { %v1837_v23 = vpop.eup %1836  ;;  %1692 = vmatmul.mubr.msk.bf16.gmra.mxu0 %vm895_vm7, %v891_v11 }
 0x1fc   :  { %v1839_v15 = vpop.eup %1838  ;;  %v885_v36 = vmul.f32 %v1837_v23, %v2260_v20 }
 0x1fd   :  { %v1841_v16 = vpop.eup %1840  ;;  %v884_v14 = vmul.f32 %v1839_v15, %v2249_v18 }
 0x1fe   :  { %v883_v21 = vmul.f32 %v1841_v16, %v2266_v62 }
 0x1ff   :  { %v893_v48 = vpack.c.bf16 %v885_v36, %v884_v14 }
 0x200   :  { %v892_v17 = vpack.c.bf16 %v883_v21, %v882_v0 }
 0x202   :  { %1695 = vmatprep.mubr.msk.bf16.mxu1 %vm895_vm7, %v892_v17 }
 0x203   :  { %1696 = vmatmul.mubr.msk.bf16.vlgmr.msra.gmra.mxu1 %vm895_vm7, %v893_v48 }
 0x2a9   :  { %v1685_v24 = vpop.f32.mrf.mxu0 }
 0x2aa   :  { %v1032_v20 = vmul.f32 %v1685_v24, %v2296_v35 }
 0x2ab   :  { %v960_v18 = vpop.f32.mrf.mxu0 }
 0x2ac   :  { %v1055_v62 = vadd.f32 %v2301_v44, %v1032_v20  ;;  %v1030_v30 = vmul.f32 %v2296_v35, %v960_v18 }
 0x2ad   :  { %v1686_v37 = vpop.f32.mrf.mxu0 }
 0x2ae   :  { %1842 = vtanh.f32 %v1055_v62  ;;  %v1053_v39 = vadd.f32 %v2301_v44, %v1030_v30  ;;  %v1033_v19 = vmul.f32 %v1686_v37, %v2296_v35 }
 0x2af   :  { %v963_v41 = vpop.f32.mrf.mxu0 }
 0x2b0   :  { %1844 = vtanh.f32 %v1053_v39  ;;  %v1056_v42 = vadd.f32 %v2301_v44, %v1033_v19  ;;  %v1031_v53 = vmul.f32 %v2296_v35, %v963_v41 }
 0x2b2   :  { %1846 = vtanh.f32 %v1056_v42  ;;  %v1054_v45 = vadd.f32 %v2301_v44, %v1031_v53  ;;  %v1689_v60 = vpop.f32.mrf.mxu0 }
 0x2b3   :  { %v1036_v25 = vmul.f32 %v1689_v60, %v2296_v35 }
 0x2b4   :  { %1848 = vtanh.f32 %v1054_v45  ;;  %v976_v40 = vpop.f32.mrf.mxu0 }
 0x2b5   :  { %v1059_v43 = vadd.f32 %v2301_v44, %v1036_v25  ;;  %v1034_v47 = vmul.f32 %v2296_v35, %v976_v40 }
 0x2b6   :  { %v1690_v26 = vpop.f32.mrf.mxu0 }
 0x2b7   :  { %1850 = vtanh.f32 %v1059_v43  ;;  %v1057_v49 = vadd.f32 %v2301_v44, %v1034_v47  ;;  %v1037_v54 = vmul.f32 %v1690_v26, %v2296_v35 }
 0x2b8   :  { %v979_v56 = vpop.f32.mrf.mxu0 }
 0x2b9   :  { %1852 = vtanh.f32 %v1057_v49  ;;  %v1060_v58 = vadd.f32 %v2301_v44, %v1037_v54  ;;  %v1035_v59 = vmul.f32 %v2296_v35, %v979_v56 }
 0x2bb   :  { %v1843_v61 = vpop.eup %1842  ;;  %1854 = vtanh.f32 %v1060_v58  ;;  %v1058_v29 = vadd.f32 %v2301_v44, %v1035_v59  ;;  %v1693_v22 = vpop.f32.mrf.mxu0 }
 0x2bc   :  { %v1040_v63 = vmul.f32 %v1693_v22, %v2296_v35  ;;  %v2320_v32 = vadd.f32 1.0, %v1843_v61 }
 0x2bd   :  { %v1845_v1 = vpop.eup %1844  ;;  %1856 = vtanh.f32 %v1058_v29  ;;  %v992_v3 = vpop.f32.mrf.mxu0 }
 0x2be   :  { %v1063_v13 = vadd.f32 %v2301_v44, %v1040_v63  ;;  %v1038_v38 = vmul.f32 %v2296_v35, %v992_v3  ;;  %v1119_v2 = vsub.f32 2.0, %v2320_v32  ;;  %v2325_v33 = vadd.f32 1.0, %v1845_v1 }
 0x2bf   :  { %v1847_v50 = vpop.eup %1846  ;;  %v1694_v11 = vpop.f32.mrf.mxu0 }
 0x2c0   :  { %1858 = vtanh.f32 %v1063_v13  ;;  %v1061_v12 = vadd.f32 %v2301_v44, %v1038_v38  ;;  %v1041_v23 = vmul.f32 %v1694_v11, %v2296_v35  ;;  %1153 = vrot.lane.b32.xlu0 %v1119_v2, %s1884_s10  ;;  %v2330_v36 = vadd.f32 1.0, %v1847_v50 }
 0x2c1   :  { %v1849_v15 = vpop.eup %1848  ;;  %v995_v16 = vpop.f32.mrf.mxu0  ;;  %v1117_v14 = vsub.f32 2.0, %v2325_v33 }
 0x2c2   :  { %1860 = vtanh.f32 %v1061_v12  ;;  %v1064_v0 = vadd.f32 %v2301_v44, %v1041_v23  ;;  %v1039_v21 = vmul.f32 %v2296_v35, %v995_v16  ;;  %v1120_v48 = vsub.f32 2.0, %v2330_v36 }
 0x2c3   :  { %v1697_v17 = vpop.f32.mrf.mxu1  ;;  %v2336_v24 = vadd.f32 1.0, %v1849_v15 }
 0x2c4   :  { %v1851_v20 = vpop.eup %1850  ;;  %1862 = vtanh.f32 %v1064_v0  ;;  %v1062_v18 = vadd.f32 %v2301_v44, %v1039_v21  ;;  %v1044_v62 = vmul.f32 %v1697_v17, %v2296_v35  ;;  %1149 = vrot.lane.b32.xlu0 %v1117_v14, %s1884_s10  ;;  %1155 = vrot.lane.b32.xlu1 %v1120_v48, %s1884_s10 }
 0x2c5   :  { %v1008_v30 = vpop.f32.mrf.mxu1  ;;  %v2342_v37 = vadd.f32 1.0, %v1851_v20  ;;  %v1118_v53 = vsub.f32 2.0, %v2336_v24 }
 0x2c6   :  { %v1853_v39 = vpop.eup %1852  ;;  %1864 = vtanh.f32 %v1062_v18  ;;  %v1067_v19 = vadd.f32 %v2301_v44, %v1044_v62  ;;  %v1042_v41 = vmul.f32 %v2296_v35, %v1008_v30 }
 0x2c7   :  { %v1698_v42 = vpop.f32.mrf.mxu1  ;;  %v1123_v45 = vsub.f32 2.0, %v2342_v37  ;;  %v2348_v60 = vadd.f32 1.0, %v1853_v39 }
 0x2c8   :  { %v1855_v25 = vpop.eup %1854  ;;  %v1065_v40 = vadd.f32 %v2301_v44, %v1042_v41  ;;  %v1045_v43 = vmul.f32 %v1698_v42, %v2296_v35  ;;  %1866 = vtanh.f32 %v1067_v19  ;;  %1151 = vrot.lane.b32.xlu1 %v1118_v53, %s1884_s10  ;;  %v1874_v19 = vld [vmem:[%s2577_s4 + $0x8] sm:$0xff]  }
 0x2c9   :  { %v1011_v47 = vpop.f32.mrf.mxu1  ;;  %1161 = vrot.lane.b32.xlu0 %v1123_v45, %s1884_s10  ;;  %v2354_v26 = vadd.f32 1.0, %v1855_v25  ;;  %v1121_v58 = vsub.f32 2.0, %v2348_v60  ;;  %v383_v41 = vunpack.c.l.bf16 %v1874_v19  ;;  %v1875_v45 = vld [vmem:[%s2577_s4] sm:$0xff]  }
 0x2ca   :  { %v1857_v49 = vpop.eup %1856  ;;  %1868 = vtanh.f32 %v1065_v40  ;;  %v1068_v54 = vadd.f32 %v2301_v44, %v1045_v43  ;;  %v1043_v56 = vmul.f32 %v2296_v35, %v1011_v47  ;;  %v381_v25 = vunpack.c.l.bf16 %v1875_v45 }
 0x2cb   :  { %v1124_v59 = vsub.f32 2.0, %v2354_v26  ;;  %v2360_v61 = vadd.f32 1.0, %v1857_v49  ;;  %v384_v40 = vunpack.c.h.bf16 %v1874_v19  ;;  %v1879_v19 = vld [vmem:[%s2577_s4 + $0x20] sm:$0xff]  }
 0x2cc   :  { %v1066_v29 = vadd.f32 %v2301_v44, %v1043_v56  ;;  %1870 = vtanh.f32 %v1068_v54  ;;  %v382_v56 = vunpack.c.h.bf16 %v1875_v45 }
 0x2cd   :  { %v1859_v22 = vpop.eup %1858  ;;  %1157 = vrot.lane.b32.xlu0 %v1121_v58, %s1884_s10  ;;  %1163 = vrot.lane.b32.xlu1 %v1124_v59, %s1884_s10  ;;  %v1122_v35 = vsub.f32 2.0, %v2360_v61  ;;  %v1876_v58 = vld [vmem:[%s2577_s4 + $0x18] sm:$0xff]  }
 0x2ce   :  { %1872 = vtanh.f32 %v1066_v29  ;;  %v2365_v63 = vadd.f32 1.0, %v1859_v22  ;;  %v387_v59 = vunpack.c.l.bf16 %v1876_v58 }
 0x2cf   :  { %v1861_v1 = vpop.eup %1860 }
 0x2d0   :  { %v1127_v3 = vsub.f32 2.0, %v2365_v63  ;;  %v2369_v13 = vadd.f32 1.0, %v1861_v1 }
 0x2d1   :  { %v1863_v38 = vpop.eup %1862  ;;  %1159 = vrot.lane.b32.xlu1 %v1122_v35, %s1884_s10 }
 0x2d2   :  { %1169 = vrot.lane.b32.xlu0 %v1127_v3, %s1884_s10  ;;  %v2373_v44 = vadd.f32 1.0, %v1863_v38  ;;  %v1125_v50 = vsub.f32 2.0, %v2369_v13  ;;  %v1877_v3 = vld [vmem:[%s2577_s4 + $0x10] sm:$0xff]  }
 0x2d3   :  { %v1865_v2 = vpop.eup %1864  ;;  %v385_v38 = vunpack.c.l.bf16 %v1877_v3 }
 0x2d4   :  { %v1128_v11 = vsub.f32 2.0, %v2373_v44  ;;  %v2377_v12 = vadd.f32 1.0, %v1865_v2  ;;  %v388_v2 = vunpack.c.h.bf16 %v1876_v58 }
 0x2d5   :  { %v1867_v23 = vpop.eup %1866 }
 0x2d6   :  { %1165 = vrot.lane.b32.xlu0 %v1125_v50, %s1884_s10  ;;  %1171 = vrot.lane.b32.xlu1 %v1128_v11, %s1884_s10  ;;  %v1126_v16 = vsub.f32 2.0, %v2377_v12  ;;  %v2386_v17 = vadd.f32 1.0, %v1867_v23 }
 0x2d7   :  { %v1869_v15 = vpop.eup %1868 }
 0x2d8   :  { %v2382_v0 = vadd.f32 1.0, %v1869_v15  ;;  %v1131_v18 = vsub.f32 2.0, %v2386_v17 }
 0x2d9   :  { %v1871_v21 = vpop.eup %1870 }
 0x2da   :  { %1167 = vrot.lane.b32.xlu1 %v1126_v16, %s1884_s10  ;;  %v1129_v14 = vsub.f32 2.0, %v2382_v0  ;;  %v2393_v30 = vadd.f32 1.0, %v1871_v21  ;;  %v386_v16 = vunpack.c.h.bf16 %v1877_v3  ;;  %v1878_v21 = vld [vmem:[%s2577_s4 + $0x28] sm:$0xff]  }
 0x2db   :  { %v1873_v48 = vpop.eup %1872 }
 0x2dc   :  { %1173 = vrot.lane.b32.xlu0 %v1129_v14, %s1884_s10  ;;  %v2389_v20 = vadd.f32 1.0, %v1873_v48  ;;  %v1132_v39 = vsub.f32 2.0, %v2393_v30  ;;  %v391_v14 = vunpack.c.l.bf16 %v1878_v21 }
 0x2de   :  { %v1130_v62 = vsub.f32 2.0, %v2389_v20 }
 0x2e0   :  { %1177 = vrot.lane.b32.xlu0 %v1131_v18, %s1884_s10  ;;  %1175 = vrot.lane.b32.xlu1 %v1130_v62, %s1884_s10 }
 0x2e4   :  { %1179 = vrot.lane.b32.xlu1 %v1132_v39, %s1884_s10 }
 0x332   :  { %v1154_v42 = vpop.permute.xlu0 %1153 }
 0x333   :  { %v1199_v53 = vmul.f32 %v1154_v42, %v383_v41  ;;  %v389_v41 = vunpack.c.l.bf16 %v1879_v19  ;;  %v392_v42 = vunpack.c.h.bf16 %v1878_v21 }
 0x335   :  { %1233 = vrot.lane.b32.xlu0 %v1199_v53, %s1883_s25 }
 0x336   :  { %v1150_v43 = vpop.permute.xlu0 %1149  ;;  %v1156_v49 = vpop.permute.xlu1 %1155 }
 0x337   :  { %v1197_v47 = vmul.f32 %v1150_v43, %v381_v25  ;;  %v1200_v54 = vmul.f32 %v1156_v49, %v384_v40  ;;  %v390_v43 = vunpack.c.h.bf16 %v1879_v19 }
 0x339   :  { %1229 = vrot.lane.b32.xlu0 %v1197_v47, %s1883_s25  ;;  %1235 = vrot.lane.b32.xlu1 %v1200_v54, %s1883_s25  ;;  %v1880_v47 = vld [vmem:[%s2577_s4 + $0x30] sm:$0xff]  }
 0x33a   :  { %v1152_v29 = vpop.permute.xlu1 %1151  ;;  %v393_v49 = vunpack.c.l.bf16 %v1880_v47 }
 0x33b   :  { %v1162_v22 = vpop.permute.xlu0 %1161  ;;  %v1198_v1 = vmul.f32 %v1152_v29, %v382_v56  ;;  %v1881_v29 = vld [vmem:[%s2577_s4 + $0x38] sm:$0xff]  }
 0x33c   :  { %v1203_v35 = vmul.f32 %v1162_v22, %v387_v59  ;;  %v395_v22 = vunpack.c.l.bf16 %v1881_v29 }
 0x33d   :  { %1231 = vrot.lane.b32.xlu1 %v1198_v1, %s1883_s25  ;;  %v394_v1 = vunpack.c.h.bf16 %v1880_v47 }
 0x33e   :  { %1241 = vrot.lane.b32.xlu0 %v1203_v35, %s1883_s25 }
 0x33f   :  { %v1158_v50 = vpop.permute.xlu0 %1157  ;;  %v1164_v11 = vpop.permute.xlu1 %1163 }
 0x340   :  { %v1201_v23 = vmul.f32 %v1158_v50, %v385_v38  ;;  %v1204_v15 = vmul.f32 %v1164_v11, %v388_v2  ;;  %v396_v50 = vunpack.c.h.bf16 %v1881_v29 }
 0x342   :  { %1237 = vrot.lane.b32.xlu0 %v1201_v23, %s1883_s25  ;;  %1243 = vrot.lane.b32.xlu1 %v1204_v15, %s1883_s25 }
 0x343   :  { %v1160_v48 = vpop.permute.xlu1 %1159 }
 0x344   :  { %v1202_v18 = vmul.f32 %v1160_v48, %v386_v16  ;;  %v1170_v62 = vpop.permute.xlu0 %1169  ;;  %v1103_v16 = vmul.f32 %v2320_v32, %v2088_v8  ;;  %v1107_v32 = vmul.f32 %v2342_v37, %v2113_v34 }
 0x345   :  { %v1207_v39 = vmul.f32 %v1170_v62, %v391_v14  ;;  %v1104_v14 = vmul.f32 %v2330_v36, %v2082_v4 }
 0x346   :  { %1239 = vrot.lane.b32.xlu1 %v1202_v18, %s1883_s25 }
 0x347   :  { %1249 = vrot.lane.b32.xlu0 %v1207_v39, %s1883_s25  ;;  %v1101_v39 = vmul.f32 %v2325_v33, %v2084_v6 }
 0x348   :  { %v1166_v53 = vpop.permute.xlu0 %1165  ;;  %v1172_v45 = vpop.permute.xlu1 %1171 }
 0x349   :  { %v1205_v25 = vmul.f32 %v1166_v53, %v389_v41  ;;  %v1208_v40 = vmul.f32 %v1172_v45, %v392_v42  ;;  %v1102_v41 = vmul.f32 %v2336_v24, %v2086_v7  ;;  %v1105_v24 = vmul.f32 %v2348_v60, %v2110_v31 }
 0x34b   :  { %1245 = vrot.lane.b32.xlu0 %v1205_v25, %s1883_s25  ;;  %1251 = vrot.lane.b32.xlu1 %v1208_v40, %s1883_s25  ;;  %v1108_v40 = vmul.f32 %v2354_v26, %v2105_v27 }
 0x34c   :  { %v1168_v54 = vpop.permute.xlu1 %1167 }
 0x34d   :  { %v1206_v56 = vmul.f32 %v1168_v54, %v390_v43 }
 0x34e   :  { %v1174_v58 = vpop.permute.xlu0 %1173 }
 0x34f   :  { %v1209_v59 = vmul.f32 %v1174_v58, %v393_v49  ;;  %1247 = vrot.lane.b32.xlu1 %v1206_v56, %s1883_s25  ;;  %v1106_v56 = vmul.f32 %v2360_v61, %v2107_v28  ;;  %v1109_v61 = vmul.f32 %v2369_v13, %v2133_v55 }
 0x351   :  { %1253 = vrot.lane.b32.xlu0 %v1209_v59, %s1883_s25 }
 0x352   :  { %v1178_v35 = vpop.permute.xlu0 %1177  ;;  %v1176_v3 = vpop.permute.xlu1 %1175 }
 0x353   :  { %v1211_v38 = vmul.f32 %v1178_v35, %v395_v22  ;;  %v1210_v2 = vmul.f32 %v1176_v3, %v394_v1  ;;  %v1111_v22 = vmul.f32 %v2365_v63, %v2135_v57  ;;  %v1112_v1 = vmul.f32 %v2373_v44, %v2127_v51 }
 0x355   :  { %1257 = vrot.lane.b32.xlu0 %v1211_v38, %s1883_s25  ;;  %1255 = vrot.lane.b32.xlu1 %v1210_v2, %s1883_s25 }
 0x356   :  { %v1180_v11 = vpop.permute.xlu1 %1179 }
 0x357   :  { %v1212_v23 = vmul.f32 %v1180_v11, %v396_v50  ;;  %v1110_v50 = vmul.f32 %v2377_v12, %v2129_v52  ;;  %v1115_v12 = vmul.f32 %v2386_v17, %v2153_v10 }
 0x359   :  { %1259 = vrot.lane.b32.xlu1 %v1212_v23, %s1883_s25 }
 0x3a7   :  { %v1234_v15 = vpop.permute.xlu0 %1233 }
 0x3a8   :  { %v1279_v18 = vadd.f32 %v1234_v15, %v1103_v16  ;;  %v1113_v16 = vmul.f32 %v2382_v0, %v2147_v5 }
 0x3ab   :  { %v1230_v21 = vpop.permute.xlu0 %1229  ;;  %v1236_v48 = vpop.permute.xlu1 %1235 }
 0x3ac   :  { %v1280_v62 = vadd.f32 %v1236_v48, %v1104_v14  ;;  %v1277_v45 = vadd.f32 %v1230_v21, %v1101_v39  ;;  %v1114_v21 = vmul.f32 %v2389_v20, %v2151_v46  ;;  %v1116_v39 = vmul.f32 %v2393_v30, %v2149_v9 }
 0x3ae   :  { %v1704_v19 = vpack.i.bf16 %v1280_v62, %v1279_v18 }
 0x3af   :  { %v1232_v53 = vpop.permute.xlu1 %1231 }
 0x3b0   :  { %v1242_v42 = vpop.permute.xlu0 %1241  ;;  %v1278_v25 = vadd.f32 %v1232_v53, %v1102_v41  ;;  %1705 = vrot.lane.b32.xlu1 %v1704_v19, %s1884_s10 }
 0x3b1   :  { %v1283_v33 = vadd.f32 %v1242_v42, %v1107_v32 }
 0x3b2   :  { %v1709_v36 = vpack.i.bf16 %v1278_v25, %v1277_v45 }
 0x3b4   :  { %v1238_v43 = vpop.permute.xlu0 %1237  ;;  %v1244_v47 = vpop.permute.xlu1 %1243  ;;  %1710 = vrot.lane.b32.xlu0 %v1709_v36, %s1884_s10 }
 0x3b5   :  { %v1284_v49 = vadd.f32 %v1244_v47, %v1108_v40  ;;  %v1281_v59 = vadd.f32 %v1238_v43, %v1105_v24 }
 0x3b7   :  { %v1714_v54 = vpack.i.bf16 %v1284_v49, %v1283_v33 }
 0x3b8   :  { %v1240_v58 = vpop.permute.xlu1 %1239 }
 0x3b9   :  { %v1250_v37 = vpop.permute.xlu0 %1249  ;;  %v1282_v29 = vadd.f32 %v1240_v58, %v1106_v56  ;;  %1715 = vrot.lane.b32.xlu1 %v1714_v54, %s1884_s10 }
 0x3ba   :  { %v1287_v60 = vadd.f32 %v1250_v37, %v1111_v22 }
 0x3bb   :  { %v1719_v26 = vpack.i.bf16 %v1282_v29, %v1281_v59 }
 0x3bd   :  { %v1252_v35 = vpop.permute.xlu1 %1251  ;;  %1720 = vrot.lane.b32.xlu0 %v1719_v26, %s1884_s10  ;;  %v1246_v38 = vpop.permute.xlu0 %1245 }
 0x3be   :  { %v1288_v3 = vadd.f32 %v1252_v35, %v1112_v1  ;;  %v1285_v23 = vadd.f32 %v1246_v38, %v1109_v61 }
 0x3c0   :  { %v1724_v2 = vpack.i.bf16 %v1288_v3, %v1287_v60 }
 0x3c1   :  { %v1248_v11 = vpop.permute.xlu1 %1247 }
 0x3c2   :  { %v1286_v15 = vadd.f32 %v1248_v11, %v1110_v50  ;;  %1725 = vrot.lane.b32.xlu1 %v1724_v2, %s1884_s10 }
 0x3c3   :  { %v1254_v63 = vpop.permute.xlu0 %1253 }
 0x3c4   :  { %v1729_v44 = vpack.i.bf16 %v1286_v15, %v1285_v23  ;;  %v1289_v14 = vadd.f32 %v1254_v63, %v1113_v16 }
 0x3c6   :  { %1730 = vrot.lane.b32.xlu0 %v1729_v44, %s1884_s10 }
 0x3c7   :  { %v1256_v13 = vpop.permute.xlu1 %1255  ;;  %v1258_v18 = vpop.permute.xlu0 %1257 }
 0x3c8   :  { %v1290_v48 = vadd.f32 %v1256_v13, %v1114_v21  ;;  %v1291_v41 = vadd.f32 %v1258_v18, %v1115_v12 }
 0x3ca   :  { %v1734_v62 = vpack.i.bf16 %v1290_v48, %v1289_v14 }
 0x3cb   :  { %v1260_v19 = vpop.permute.xlu1 %1259 }
 0x3cc   :  { %v1292_v42 = vadd.f32 %v1260_v19, %v1116_v39  ;;  %1735 = vrot.lane.b32.xlu0 %v1734_v62, %s1884_s10 }
 0x3ce   :  { %v1739_v0 = vpack.i.bf16 %v1292_v42, %v1291_v41 }
 0x3d0   :  { %1740 = vrot.lane.b32.xlu1 %v1739_v0, %s1884_s10 }
 0x422   :  { %v1706_v20 = vpop.permute.xlu1 %1705 }
 0x423   :  { %v1708_v53 = vunpack.i.h.bf16 %v1706_v20  ;;  %v1707_v45 = vunpack.i.l.bf16 %v1706_v20 }
 0x425   :  { %v1360_v25 = vsel %vm470_vm6, %v2082_v4, %v1708_v53  ;;  %v1359_v17 = vsel %vm470_vm6, %v2088_v8, %v1707_v45 }
 0x426   :  { %v1557_v32 = vpack.c.bf16 %v1360_v25, %v1360_v25  ;;  %v1556_v30 = vpack.c.bf16 %v1359_v17, %v1359_v17  ;;  %v1711_v36 = vpop.permute.xlu0 %1710 }
 0x427   :  { %v1713_v40 = vunpack.i.h.bf16 %v1711_v36  ;;  %v1712_v43 = vunpack.i.l.bf16 %v1711_v36 }
 0x428   :  { %1441 = vst.msk [vmem:[%s2587_s12 + $0xc] sm:$0xf] %vm1437_vm8, %v1557_v32  ;;  %1440 = vst.msk [vmem:[%s2587_s12 + $0x8] sm:$0xf] %vm1437_vm8, %v1556_v30 }
 0x429   :  { %v1358_v4 = vsel %vm470_vm6, %v2086_v7, %v1713_v40  ;;  %v1357_v8 = vsel %vm470_vm6, %v2084_v6, %v1712_v43 }
 0x42a   :  { %v1555_v47 = vpack.c.bf16 %v1358_v4, %v1358_v4  ;;  %v1554_v33 = vpack.c.bf16 %v1357_v8, %v1357_v8 }
 0x42b   :  { %v1716_v49 = vpop.permute.xlu1 %1715 }
 0x42c   :  { %v1718_v24 = vunpack.i.h.bf16 %v1716_v49  ;;  %v1717_v54 = vunpack.i.l.bf16 %v1716_v49  ;;  %1439 = vst.msk [vmem:[%s2587_s12 + $0x4] sm:$0xf] %vm1437_vm8, %v1555_v47  ;;  %1438 = vst.msk [vmem:[%s2587_s12] sm:$0xf] %vm1437_vm8, %v1554_v33 }
 0x42e   :  { %v1364_v7 = vsel %vm470_vm6, %v2105_v27, %v1718_v24  ;;  %v1363_v6 = vsel %vm470_vm6, %v2113_v34, %v1717_v54 }
 0x42f   :  { %v1561_v56 = vpack.c.bf16 %v1364_v7, %v1364_v7  ;;  %v1560_v58 = vpack.c.bf16 %v1363_v6, %v1363_v6  ;;  %v1721_v59 = vpop.permute.xlu0 %1720 }
 0x430   :  { %v1723_v37 = vunpack.i.h.bf16 %v1721_v59  ;;  %v1722_v29 = vunpack.i.l.bf16 %v1721_v59 }
 0x431   :  { %1445 = vst.msk [vmem:[%s2587_s12 + $0x1c] sm:$0xf] %vm1437_vm8, %v1561_v56  ;;  %1444 = vst.msk [vmem:[%s2587_s12 + $0x18] sm:$0xf] %vm1437_vm8, %v1560_v58 }
 0x432   :  { %v1362_v27 = vsel %vm470_vm6, %v2107_v28, %v1723_v37  ;;  %v1361_v34 = vsel %vm470_vm6, %v2110_v31, %v1722_v29 }
 0x433   :  { %v1559_v26 = vpack.c.bf16 %v1362_v27, %v1362_v27  ;;  %v1558_v22 = vpack.c.bf16 %v1361_v34, %v1361_v34 }
 0x434   :  { %v1726_v1 = vpop.permute.xlu1 %1725 }
 0x435   :  { %1443 = vst.msk [vmem:[%s2587_s12 + $0x14] sm:$0xf] %vm1437_vm8, %v1559_v26  ;;  %1442 = vst.msk [vmem:[%s2587_s12 + $0x10] sm:$0xf] %vm1437_vm8, %v1558_v22  ;;  %v1728_v35 = vunpack.i.h.bf16 %v1726_v1  ;;  %v1727_v60 = vunpack.i.l.bf16 %v1726_v1 }
 0x437   :  { %v1368_v28 = vsel %vm470_vm6, %v2127_v51, %v1728_v35  ;;  %v1367_v31 = vsel %vm470_vm6, %v2135_v57, %v1727_v60 }
 0x438   :  { %v1565_v3 = vpack.c.bf16 %v1368_v28, %v1368_v28  ;;  %v1564_v38 = vpack.c.bf16 %v1367_v31, %v1367_v31  ;;  %v1731_v61 = vpop.permute.xlu0 %1730 }
 0x439   :  { %v1733_v2 = vunpack.i.h.bf16 %v1731_v61  ;;  %v1732_v50 = vunpack.i.l.bf16 %v1731_v61 }
 0x43a   :  { %1449 = vst.msk [vmem:[%s2587_s12 + $0x2c] sm:$0xf] %vm1437_vm8, %v1565_v3  ;;  %1448 = vst.msk [vmem:[%s2587_s12 + $0x28] sm:$0xf] %vm1437_vm8, %v1564_v38 }
 0x43b   :  { %v1366_v51 = vsel %vm470_vm6, %v2129_v52, %v1733_v2  ;;  %v1365_v57 = vsel %vm470_vm6, %v2133_v55, %v1732_v50 }
 0x43c   :  { %v1563_v11 = vpack.c.bf16 %v1366_v51, %v1366_v51  ;;  %v1562_v23 = vpack.c.bf16 %v1365_v57, %v1365_v57 }
 0x43e   :  { %1447 = vst.msk [vmem:[%s2587_s12 + $0x24] sm:$0xf] %vm1437_vm8, %v1563_v11  ;;  %1446 = vst.msk [vmem:[%s2587_s12 + $0x20] sm:$0xf] %vm1437_vm8, %v1562_v23  ;;  %v1736_v15 = vpop.permute.xlu0 %1735 }
 0x43f   :  { %v1738_v63 = vunpack.i.h.bf16 %v1736_v15  ;;  %v1737_v44 = vunpack.i.l.bf16 %v1736_v15 }
 0x441   :  { %v1370_v52 = vsel %vm470_vm6, %v2151_v46, %v1738_v63  ;;  %v1369_v55 = vsel %vm470_vm6, %v2147_v5, %v1737_v44 }
 0x442   :  { %v1567_v16 = vpack.c.bf16 %v1370_v52, %v1370_v52  ;;  %v1566_v21 = vpack.c.bf16 %v1369_v55, %v1369_v55  ;;  %v1741_v13 = vpop.permute.xlu1 %1740 }
 0x443   :  { %v1743_v14 = vunpack.i.h.bf16 %v1741_v13  ;;  %v1742_v48 = vunpack.i.l.bf16 %v1741_v13 }
 0x444   :  { %1451 = vst.msk [vmem:[%s2587_s12 + $0x34] sm:$0xf] %vm1437_vm8, %v1567_v16  ;;  %1450 = vst.msk [vmem:[%s2587_s12 + $0x30] sm:$0xf] %vm1437_vm8, %v1566_v21 }
 0x445   :  { %v1372_v46 = vsel %vm470_vm6, %v2149_v9, %v1743_v14  ;;  %v1371_v5 = vsel %vm470_vm6, %v2153_v10, %v1742_v48 }
 0x446   :  { %v1569_v18 = vpack.c.bf16 %v1372_v46, %v1372_v46  ;;  %v1568_v12 = vpack.c.bf16 %v1371_v5, %v1371_v5 }
 0x448   :  { %1453 = vst.msk [vmem:[%s2587_s12 + $0x3c] sm:$0xf] %vm1437_vm8, %v1569_v18  ;;  %1452 = vst.msk [vmem:[%s2587_s12 + $0x38] sm:$0xf] %vm1437_vm8, %v1568_v12 }

</bundles_post_ra>
